<compile_context>
chip_gen: v5e
topology: v5e:2x2
jax: 0.10.0
libtpu: 0.0.40
codegen_flags: <defaults>
</compile_context>

<pallas_src>
import functools

import jax
import jax.numpy as jnp
from jax import lax
from jax.experimental import pallas as pl
from jax.experimental.pallas import tpu as pltpu

D_MODEL = 32          # d_model (small test size, consistent with the module)
N_HEAD = 4            # n_head
HEAD_DIM = D_MODEL // N_HEAD
EPS = 1e-5            # nn.LayerNorm default eps


def _layernorm(x, gamma, beta):
    mean = jnp.mean(x, axis=-1, keepdims=True)
    var = jnp.mean((x - mean) ** 2, axis=-1, keepdims=True)
    return (x - mean) * lax.rsqrt(var + EPS) * gamma + beta


def cross_kernel(B, S, x_ref, maskv_ref,
                 wq_ref, wk_ref, wv_ref, bq_ref, bk_ref, bv_ref,
                 wo_ref, bo_ref,
                 g1_ref, be1_ref, g2_ref, be2_ref,
                 w1_ref, b1_ref, w2_ref, b2_ref,
                 out_ref):
    """Single invocation: all batch rows, both outputs, everything in VMEM.

    x_ref: (2*B*S, D) rows ordered (b, src, s); src 0 = input1, src 1 = input2.
    """
    D = x_ref.shape[-1]
    N = B * S
    H = N_HEAD
    HD = D // H
    HS = H * S
    S2 = 2 * S

    x = x_ref[...]                              # (2N, D)
    x3 = x.reshape(B, S2, D)                    # per batch: [src1 rows; src2 rows]
    dif3 = x3[:, S:, :] - x3[:, :S, :]          # (B, S, D) -- in-kernel, free VPU work
    dif2 = dif3.reshape(N, D)

    # ---- projections (weights pre-transposed at pack time, no in-kernel .T) ----
    q2 = jnp.dot(x, wq_ref[...], preferred_element_type=jnp.float32) + bq_ref[...]
    k2 = jnp.dot(dif2, wk_ref[...], preferred_element_type=jnp.float32) + bk_ref[...]
    v2 = jnp.dot(dif2, wv_ref[...], preferred_element_type=jnp.float32) + bv_ref[...]

    q3 = q2.reshape(B, S2, D)                   # (B, 2S, D): both sources' queries
    k3 = k2.reshape(B, S, D)
    v3 = v2.reshape(B, S, D)

    # ---- block-diagonal head packing (mask is a host-built constant input) ----
    # k_rep[b, h*S+t, d] = k[b, t, d] if feature d belongs to head h else 0
    maskv = maskv_ref[...]                      # (HS, D), broadcasts over batch
    k_rep = jnp.concatenate([k3] * H, axis=1) * maskv      # (B, HS, D)
    v_rep = jnp.concatenate([v3] * H, axis=1) * maskv      # (B, HS, D)

    scale = 1.0 / (HD ** 0.5)
    # batched MXU matmul, contraction on the feature axis (no transpose needed)
    s = jnp.einsum('bqd,bpd->bqp', q3, k_rep,
                   preferred_element_type=jnp.float32) * scale   # (B, 2S, HS)

    # ---- per-head softmax (per-head max + per-head sum, exact division) ----
    s4 = s.reshape(B, S2, H, S)
    m = jnp.max(s4, axis=-1, keepdims=True)
    e = jnp.exp(s4 - m)
    den = jnp.sum(e, axis=-1, keepdims=True)
    p = (e / den).reshape(B, S2, HS)

    o3 = jnp.einsum('bqp,bpd->bqd', p, v_rep,
                    preferred_element_type=jnp.float32)          # (B, 2S, D)
    attn = o3.reshape(2 * N, D)                                  # same row order as x

    # ---- output projection + residual + norm1 (both sources stacked) ----
    attn = jnp.dot(attn, wo_ref[...], preferred_element_type=jnp.float32) + bo_ref[...]
    h1 = _layernorm(x + attn, g1_ref[...], be1_ref[...])

    # ---- feed-forward + residual + norm2 ----
    ff = jnp.dot(h1, w1_ref[...], preferred_element_type=jnp.float32) + b1_ref[...]
    ff = jnp.maximum(ff, 0.0)
    ff = jnp.dot(ff, w2_ref[...], preferred_element_type=jnp.float32) + b2_ref[...]
    out = _layernorm(h1 + ff, g2_ref[...], be2_ref[...])         # (2N, D)

    out_ref[...] = out                          # one contiguous store, no un-flatten


def _cross_pallas(x_all, B, S, kparams):
    """x_all: (2*B*S, D) stacked/flattened inputs, batch-major (b, src, s) rows."""
    D = x_all.shape[-1]
    N = B * S
    H, HS = N_HEAD, N_HEAD * S

    kernel = functools.partial(cross_kernel, B, S)

    matmul_flops = (
        2 * (2 * N) * D * D                # Q projection
        + 2 * 2 * N * D * D                # K, V projections
        + 2 * 2 * B * (2 * S) * HS * D     # scores + PV
        + 2 * (2 * N) * D * D              # output projection
        + 2 * 2 * (2 * N) * D * (4 * D)    # FFN
    )
    in_bytes = (x_all.size + sum(int(p.size) for p in kparams)) * 4
    out_bytes = 2 * N * D * 4

    return pl.pallas_call(
        kernel,
        out_shape=jax.ShapeDtypeStruct((2 * N, D), jnp.float32),
        # no grid: single invocation, whole working set resident in VMEM
        cost_estimate=pl.CostEstimate(
            flops=int(matmul_flops),
            transcendentals=int(B * (2 * S) * HS + 4 * N),
            bytes_accessed=int(in_bytes + out_bytes)),
    )(x_all, *kparams)


def init_params(key, d_model=D_MODEL):
    """PyTorch-layout synthetic parameters (nn.Linear convention: W is (out, in))."""
    ks = jax.random.split(key, 12)
    s = 0.05
    wq = jax.random.normal(ks[0], (d_model, d_model), jnp.float32) * s
    wk = jax.random.normal(ks[1], (d_model, d_model), jnp.float32) * s
    wv = jax.random.normal(ks[2], (d_model, d_model), jnp.float32) * s
    bq = jax.random.normal(ks[3], (d_model,), jnp.float32) * s
    bk = jax.random.normal(ks[4], (d_model,), jnp.float32) * s
    bv = jax.random.normal(ks[5], (d_model,), jnp.float32) * s
    wo = jax.random.normal(ks[6], (d_model, d_model), jnp.float32) * s
    bo = jax.random.normal(ks[7], (d_model,), jnp.float32) * s
    g1 = jnp.ones((d_model,), jnp.float32)
    be1 = jnp.zeros((d_model,), jnp.float32)
    g2 = jnp.ones((d_model,), jnp.float32)
    be2 = jnp.zeros((d_model,), jnp.float32)
    w1 = jax.random.normal(ks[8], (4 * d_model, d_model), jnp.float32) * s
    b1 = jax.random.normal(ks[9], (4 * d_model,), jnp.float32) * s
    w2 = jax.random.normal(ks[10], (d_model, 4 * d_model), jnp.float32) * s
    b2 = jax.random.normal(ks[11], (d_model,), jnp.float32) * s
    return (wq, wk, wv, bq, bk, bv, wo, bo, g1, be1, g2, be2, w1, b1, w2, b2)


def pack_params(p, seq_len):
    """Pre-transpose PyTorch-layout params and build the constant head mask (once)."""
    (wq, wk, wv, bq, bk, bv, wo, bo, g1, be1, g2, be2, w1, b1, w2, b2) = p
    d_model = wq.shape[0]
    hd = d_model // N_HEAD
    hs = N_HEAD * seq_len
    row = lambda v: v.reshape(1, -1)
    # mask_v[h*S + t, d] == 1 iff feature d belongs to head h (host-built constant)
    mask_v = (jnp.arange(hs)[:, None] // seq_len ==
              jnp.arange(d_model)[None, :] // hd).astype(jnp.float32)
    return (
        mask_v,                                     # (H*S, D)
        wq.T, wk.T, wv.T,                           # (D, D) each
        row(bq), row(bk), row(bv),                  # (1, D)
        wo.T, row(bo),
        row(g1), row(be1), row(g2), row(be2),
        w1.T, row(b1),                              # (D, 4D), (1, 4D)
        w2.T, row(b2),                              # (4D, D), (1, D)
    )


def cross_transformer_forward(input1_sbd, input2_sbd, kernel_params):
    """Matches CrossTransformer.forward. Inputs are (S, B, D); one fused kernel call.

    All layout plumbing (transpose to batch-major, stacking both sources into one
    contiguous slab, and the inverse on the output) happens here on contiguous
    data so the kernel body is matmul + softmax only.
    """
    S, B, D = input1_sbd.shape
    N = S * B
    x1 = jnp.transpose(input1_sbd, (1, 0, 2))                 # (B, S, D)
    x2 = jnp.transpose(input2_sbd, (1, 0, 2))
    x_all = jnp.stack([x1, x2], axis=1).reshape(2 * N, D)     # rows: (b, src, s)

    out = _cross_pallas(x_all, B, S, kernel_params)           # (2N, D)

    out4 = out.reshape(B, 2, S, D)
    out1 = jnp.transpose(out4[:, 0], (1, 0, 2))               # (S, B, D)
    out2 = jnp.transpose(out4[:, 1], (1, 0, 2))
    return out1, out2


# ----------------------------- pure-JAX reference -----------------------------
def _cross_ref(x_bsd, dif_bsd, params):
    (wq, wk, wv, bq, bk, bv, wo, bo, g1, be1, g2, be2, w1, b1, w2, b2) = params
    q = x_bsd @ wq.T + bq
    k = dif_bsd @ wk.T + bk
    v = dif_bsd @ wv.T + bv
    B, S, D = q.shape
    H, hd = N_HEAD, HEAD_DIM
    qh = q.reshape(B, S, H, hd).transpose(0, 2, 1, 3)
    kh = k.reshape(B, S, H, hd).transpose(0, 2, 1, 3)
    vh = v.reshape(B, S, H, hd).transpose(0, 2, 1, 3)
    s = jnp.einsum("bhqd,bhkd->bhqk", qh, kh) / (hd ** 0.5)
    p = jax.nn.softmax(s, axis=-1)
    a = jnp.einsum("bhqk,bhkd->bhqd", p, vh).transpose(0, 2, 1, 3).reshape(B, S, D)
    a = a @ wo.T + bo
    out = x_bsd + a
    out = (out - out.mean(-1, keepdims=True)) * lax.rsqrt(out.var(-1, keepdims=True) + EPS) * g1 + be1
    ff = jnp.maximum(out @ w1.T + b1, 0.0) @ w2.T + b2
    out2 = out + ff
    out2 = (out2 - out2.mean(-1, keepdims=True)) * lax.rsqrt(out2.var(-1, keepdims=True) + EPS) * g2 + be2
    return out2


if __name__ == "__main__":
    key = jax.random.PRNGKey(0)
    k_in1, k_in2, k_par = jax.random.split(key, 3)

    S, B, D = 8, 2, D_MODEL   # (seq, batch, d_model) — PyTorch MHA default layout
    input1 = jax.random.normal(k_in1, (S, B, D), jnp.float32)
    input2 = jax.random.normal(k_in2, (S, B, D), jnp.float32)

    torch_params = init_params(k_par)
    kernel_params = pack_params(torch_params, S)

    out1, out2 = cross_transformer_forward(input1, input2, kernel_params)
    out1 = jax.block_until_ready(out1)
    out2 = jax.block_until_ready(out2)

    # correctness check against a pure-JAX reference (reference works in (B,S,D))
    dif = input2 - input1
    to_bsd = lambda t: jnp.transpose(t, (1, 0, 2))
    to_sbd = lambda t: jnp.transpose(t, (1, 0, 2))
    ref1 = to_sbd(_cross_ref(to_bsd(input1), to_bsd(dif), torch_params))
    ref2 = to_sbd(_cross_ref(to_bsd(input2), to_bsd(dif), torch_params))

    # exact softmax normalization now (no approx reciprocal) -> tighter tolerance
    assert jnp.allclose(out1, ref1, rtol=1e-3, atol=1e-3), "output_1 mismatch"
    assert jnp.allclose(out2, ref2, rtol=1e-3, atol=1e-3), "output_2 mismatch"

    print("KERNEL_OK")
</pallas_src>

<mosaic_0001>
module attributes {stable_mosaic.version = 11 : i64} {
  func.func @cross_kernel(%arg0: memref<32x32xf32, #tpu.memory_space<vmem>>, %arg1: memref<32x32xf32, #tpu.memory_space<vmem>>, %arg2: memref<32x32xf32, #tpu.memory_space<vmem>>, %arg3: memref<32x32xf32, #tpu.memory_space<vmem>>, %arg4: memref<32x32xf32, #tpu.memory_space<vmem>>, %arg5: memref<1x32xf32, #tpu.memory_space<vmem>>, %arg6: memref<1x32xf32, #tpu.memory_space<vmem>>, %arg7: memref<1x32xf32, #tpu.memory_space<vmem>>, %arg8: memref<32x32xf32, #tpu.memory_space<vmem>>, %arg9: memref<1x32xf32, #tpu.memory_space<vmem>>, %arg10: memref<1x32xf32, #tpu.memory_space<vmem>>, %arg11: memref<1x32xf32, #tpu.memory_space<vmem>>, %arg12: memref<1x32xf32, #tpu.memory_space<vmem>>, %arg13: memref<1x32xf32, #tpu.memory_space<vmem>>, %arg14: memref<32x128xf32, #tpu.memory_space<vmem>>, %arg15: memref<1x128xf32, #tpu.memory_space<vmem>>, %arg16: memref<128x32xf32, #tpu.memory_space<vmem>>, %arg17: memref<1x32xf32, #tpu.memory_space<vmem>>, %arg18: memref<32x32xf32, #tpu.memory_space<vmem>>) attributes {dimension_semantics = [], scalar_prefetch = 0 : i64, scratch_operands = 0 : i64, tpu.core_type = #tpu.core_type<tc>} {
    %c0 = arith.constant 0 : index
    %c0_0 = arith.constant 0 : index
    %0 = vector.load %arg0[%c0, %c0_0] : memref<32x32xf32, #tpu.memory_space<vmem>>, vector<32x32xf32>
    %1 = vector.shape_cast %0 : vector<32x32xf32> to vector<2x16x32xf32>
    %2 = vector.extract_strided_slice %1 {offsets = [0, 8, 0], sizes = [2, 8, 32], strides = [1, 1, 1]} : vector<2x16x32xf32> to vector<2x8x32xf32>
    %3 = vector.extract_strided_slice %1 {offsets = [0, 0, 0], sizes = [2, 8, 32], strides = [1, 1, 1]} : vector<2x16x32xf32> to vector<2x8x32xf32>
    %4 = arith.subf %2, %3 : vector<2x8x32xf32>
    %5 = vector.shape_cast %4 : vector<2x8x32xf32> to vector<16x32xf32>
    %c0_1 = arith.constant 0 : index
    %c0_2 = arith.constant 0 : index
    %6 = vector.load %arg2[%c0_1, %c0_2] : memref<32x32xf32, #tpu.memory_space<vmem>>, vector<32x32xf32>
    %cst = arith.constant dense<0.000000e+00> : vector<32x32xf32>
    %7 = tpu.matmul %0, %6, %cst {dimension_numbers = #tpu.dot_dimension_numbers<[1], [0], [0], [1], [0, 0, 1, 1], [], []>} : vector<32x32xf32>, vector<32x32xf32>, vector<32x32xf32> -> vector<32x32xf32>
    %c0_3 = arith.constant 0 : index
    %c0_4 = arith.constant 0 : index
    %8 = vector.load %arg5[%c0_3, %c0_4] : memref<1x32xf32, #tpu.memory_space<vmem>>, vector<1x32xf32>
    %9 = vector.broadcast %8 : vector<1x32xf32> to vector<32x32xf32>
    %10 = arith.addf %7, %9 : vector<32x32xf32>
    %c0_5 = arith.constant 0 : index
    %c0_6 = arith.constant 0 : index
    %11 = vector.load %arg3[%c0_5, %c0_6] : memref<32x32xf32, #tpu.memory_space<vmem>>, vector<32x32xf32>
    %cst_7 = arith.constant dense<0.000000e+00> : vector<16x32xf32>
    %12 = tpu.matmul %5, %11, %cst_7 {dimension_numbers = #tpu.dot_dimension_numbers<[1], [0], [0], [1], [0, 0, 1, 1], [], []>} : vector<16x32xf32>, vector<32x32xf32>, vector<16x32xf32> -> vector<16x32xf32>
    %c0_8 = arith.constant 0 : index
    %c0_9 = arith.constant 0 : index
    %13 = vector.load %arg6[%c0_8, %c0_9] : memref<1x32xf32, #tpu.memory_space<vmem>>, vector<1x32xf32>
    %14 = vector.broadcast %13 : vector<1x32xf32> to vector<16x32xf32>
    %15 = arith.addf %12, %14 : vector<16x32xf32>
    %c0_10 = arith.constant 0 : index
    %c0_11 = arith.constant 0 : index
    %16 = vector.load %arg4[%c0_10, %c0_11] : memref<32x32xf32, #tpu.memory_space<vmem>>, vector<32x32xf32>
    %cst_12 = arith.constant dense<0.000000e+00> : vector<16x32xf32>
    %17 = tpu.matmul %5, %16, %cst_12 {dimension_numbers = #tpu.dot_dimension_numbers<[1], [0], [0], [1], [0, 0, 1, 1], [], []>} : vector<16x32xf32>, vector<32x32xf32>, vector<16x32xf32> -> vector<16x32xf32>
    %c0_13 = arith.constant 0 : index
    %c0_14 = arith.constant 0 : index
    %18 = vector.load %arg7[%c0_13, %c0_14] : memref<1x32xf32, #tpu.memory_space<vmem>>, vector<1x32xf32>
    %19 = vector.broadcast %18 : vector<1x32xf32> to vector<16x32xf32>
    %20 = arith.addf %17, %19 : vector<16x32xf32>
    %21 = vector.shape_cast %10 : vector<32x32xf32> to vector<2x16x32xf32>
    %22 = vector.shape_cast %15 : vector<16x32xf32> to vector<2x8x32xf32>
    %23 = vector.shape_cast %20 : vector<16x32xf32> to vector<2x8x32xf32>
    %c0_15 = arith.constant 0 : index
    %c0_16 = arith.constant 0 : index
    %24 = vector.load %arg1[%c0_15, %c0_16] : memref<32x32xf32, #tpu.memory_space<vmem>>, vector<32x32xf32>
    %25 = tpu.concatenate %22, %22, %22, %22 in 1 : vector<2x8x32xf32>, vector<2x8x32xf32>, vector<2x8x32xf32>, vector<2x8x32xf32> -> vector<2x32x32xf32>
    %26 = vector.shape_cast %24 : vector<32x32xf32> to vector<1x32x32xf32>
    %27 = vector.broadcast %26 : vector<1x32x32xf32> to vector<2x32x32xf32>
    %28 = arith.mulf %25, %27 : vector<2x32x32xf32>
    %29 = tpu.concatenate %23, %23, %23, %23 in 1 : vector<2x8x32xf32>, vector<2x8x32xf32>, vector<2x8x32xf32>, vector<2x8x32xf32> -> vector<2x32x32xf32>
    %30 = vector.shape_cast %24 : vector<32x32xf32> to vector<1x32x32xf32>
    %31 = vector.broadcast %30 : vector<1x32x32xf32> to vector<2x32x32xf32>
    %32 = arith.mulf %29, %31 : vector<2x32x32xf32>
    "tpu.trace_start"() <{level = 10 : i32, message = "bqd,bpd->bqp"}> : () -> ()
    %cst_17 = arith.constant dense<0.000000e+00> : vector<2x16x32xf32>
    %33 = tpu.matmul %21, %28, %cst_17 {dimension_numbers = #tpu.dot_dimension_numbers<[2], [2], [1], [1], [0, 0, 0, 1, 1, 1], [0], [0]>} : vector<2x16x32xf32>, vector<2x32x32xf32>, vector<2x16x32xf32> -> vector<2x16x32xf32>
    "tpu.trace_stop"() : () -> ()
    %cst_18 = arith.constant 0.353553385 : f32
    %34 = vector.broadcast %cst_18 : f32 to vector<2x16x32xf32>
    %35 = arith.mulf %33, %34 : vector<2x16x32xf32>
    %36 = vector.shape_cast %35 : vector<2x16x32xf32> to vector<2x16x4x8xf32>
    %cst_19 = arith.constant dense<0xFF800000> : vector<2x16x4xf32>
    %37 = vector.multi_reduction <maximumf>, %36, %cst_19 [3] : vector<2x16x4x8xf32> to vector<2x16x4xf32>
    %38 = vector.shape_cast %37 : vector<2x16x4xf32> to vector<2x16x4x1xf32>
    %39 = vector.broadcast %38 : vector<2x16x4x1xf32> to vector<2x16x4x8xf32>
    %40 = arith.subf %36, %39 : vector<2x16x4x8xf32>
    %41 = math.exp %40 : vector<2x16x4x8xf32>
    %cst_20 = arith.constant dense<0.000000e+00> : vector<2x16x4xf32>
    %42 = vector.multi_reduction <add>, %41, %cst_20 [3] : vector<2x16x4x8xf32> to vector<2x16x4xf32>
    %43 = vector.shape_cast %42 : vector<2x16x4xf32> to vector<2x16x4x1xf32>
    %44 = vector.broadcast %43 : vector<2x16x4x1xf32> to vector<2x16x4x8xf32>
    %45 = arith.divf %41, %44 : vector<2x16x4x8xf32>
    %46 = vector.shape_cast %45 : vector<2x16x4x8xf32> to vector<2x16x32xf32>
    "tpu.trace_start"() <{level = 10 : i32, message = "bqp,bpd->bqd"}> : () -> ()
    %cst_21 = arith.constant dense<0.000000e+00> : vector<2x16x32xf32>
    %47 = tpu.matmul %46, %32, %cst_21 {dimension_numbers = #tpu.dot_dimension_numbers<[2], [1], [1], [2], [0, 0, 0, 1, 1, 2], [0], [0]>} : vector<2x16x32xf32>, vector<2x32x32xf32>, vector<2x16x32xf32> -> vector<2x16x32xf32>
    "tpu.trace_stop"() : () -> ()
    %48 = vector.shape_cast %47 : vector<2x16x32xf32> to vector<32x32xf32>
    %c0_22 = arith.constant 0 : index
    %c0_23 = arith.constant 0 : index
    %49 = vector.load %arg8[%c0_22, %c0_23] : memref<32x32xf32, #tpu.memory_space<vmem>>, vector<32x32xf32>
    %cst_24 = arith.constant dense<0.000000e+00> : vector<32x32xf32>
    %50 = tpu.matmul %48, %49, %cst_24 {dimension_numbers = #tpu.dot_dimension_numbers<[1], [0], [0], [1], [0, 0, 1, 1], [], []>} : vector<32x32xf32>, vector<32x32xf32>, vector<32x32xf32> -> vector<32x32xf32>
    %c0_25 = arith.constant 0 : index
    %c0_26 = arith.constant 0 : index
    %51 = vector.load %arg9[%c0_25, %c0_26] : memref<1x32xf32, #tpu.memory_space<vmem>>, vector<1x32xf32>
    %52 = vector.broadcast %51 : vector<1x32xf32> to vector<32x32xf32>
    %53 = arith.addf %50, %52 : vector<32x32xf32>
    %54 = arith.addf %0, %53 : vector<32x32xf32>
    %c0_27 = arith.constant 0 : index
    %c0_28 = arith.constant 0 : index
    %55 = vector.load %arg10[%c0_27, %c0_28] : memref<1x32xf32, #tpu.memory_space<vmem>>, vector<1x32xf32>
    %c0_29 = arith.constant 0 : index
    %c0_30 = arith.constant 0 : index
    %56 = vector.load %arg11[%c0_29, %c0_30] : memref<1x32xf32, #tpu.memory_space<vmem>>, vector<1x32xf32>
    %cst_31 = arith.constant dense<0.000000e+00> : vector<32xf32>
    %57 = vector.multi_reduction <add>, %54, %cst_31 [1] : vector<32x32xf32> to vector<32xf32>
    %58 = vector.shape_cast %57 : vector<32xf32> to vector<32x1xf32>
    %cst_32 = arith.constant 3.200000e+01 : f32
    %59 = vector.broadcast %cst_32 : f32 to vector<32x1xf32>
    %60 = arith.divf %58, %59 : vector<32x1xf32>
    %61 = vector.broadcast %60 : vector<32x1xf32> to vector<32x32xf32>
    %62 = arith.subf %54, %61 : vector<32x32xf32>
    %63 = arith.mulf %62, %62 : vector<32x32xf32>
    %cst_33 = arith.constant dense<0.000000e+00> : vector<32xf32>
    %64 = vector.multi_reduction <add>, %63, %cst_33 [1] : vector<32x32xf32> to vector<32xf32>
    %65 = vector.shape_cast %64 : vector<32xf32> to vector<32x1xf32>
    %cst_34 = arith.constant 3.200000e+01 : f32
    %66 = vector.broadcast %cst_34 : f32 to vector<32x1xf32>
    %67 = arith.divf %65, %66 : vector<32x1xf32>
    %68 = vector.broadcast %60 : vector<32x1xf32> to vector<32x32xf32>
    %69 = arith.subf %54, %68 : vector<32x32xf32>
    %cst_35 = arith.constant 9.99999974E-6 : f32
    %70 = vector.broadcast %cst_35 : f32 to vector<32x1xf32>
    %71 = arith.addf %67, %70 : vector<32x1xf32>
    %72 = math.rsqrt %71 : vector<32x1xf32>
    %73 = vector.broadcast %72 : vector<32x1xf32> to vector<32x32xf32>
    %74 = arith.mulf %69, %73 : vector<32x32xf32>
    %75 = vector.broadcast %55 : vector<1x32xf32> to vector<32x32xf32>
    %76 = arith.mulf %74, %75 : vector<32x32xf32>
    %77 = vector.broadcast %56 : vector<1x32xf32> to vector<32x32xf32>
    %78 = arith.addf %76, %77 : vector<32x32xf32>
    %c0_36 = arith.constant 0 : index
    %c0_37 = arith.constant 0 : index
    %79 = vector.load %arg14[%c0_36, %c0_37] : memref<32x128xf32, #tpu.memory_space<vmem>>, vector<32x128xf32>
    %cst_38 = arith.constant dense<0.000000e+00> : vector<32x128xf32>
    %80 = tpu.matmul %78, %79, %cst_38 {dimension_numbers = #tpu.dot_dimension_numbers<[1], [0], [0], [1], [0, 0, 1, 1], [], []>} : vector<32x32xf32>, vector<32x128xf32>, vector<32x128xf32> -> vector<32x128xf32>
    %c0_39 = arith.constant 0 : index
    %c0_40 = arith.constant 0 : index
    %81 = vector.load %arg15[%c0_39, %c0_40] : memref<1x128xf32, #tpu.memory_space<vmem>>, vector<1x128xf32>
    %82 = vector.broadcast %81 : vector<1x128xf32> to vector<32x128xf32>
    %83 = arith.addf %80, %82 : vector<32x128xf32>
    %cst_41 = arith.constant 0.000000e+00 : f32
    %84 = vector.broadcast %cst_41 : f32 to vector<32x128xf32>
    %85 = arith.maximumf %83, %84 : vector<32x128xf32>
    %c0_42 = arith.constant 0 : index
    %c0_43 = arith.constant 0 : index
    %86 = vector.load %arg16[%c0_42, %c0_43] : memref<128x32xf32, #tpu.memory_space<vmem>>, vector<128x32xf32>
    %cst_44 = arith.constant dense<0.000000e+00> : vector<32x32xf32>
    %87 = tpu.matmul %85, %86, %cst_44 {dimension_numbers = #tpu.dot_dimension_numbers<[1], [0], [0], [1], [0, 0, 1, 1], [], []>} : vector<32x128xf32>, vector<128x32xf32>, vector<32x32xf32> -> vector<32x32xf32>
    %c0_45 = arith.constant 0 : index
    %c0_46 = arith.constant 0 : index
    %88 = vector.load %arg17[%c0_45, %c0_46] : memref<1x32xf32, #tpu.memory_space<vmem>>, vector<1x32xf32>
    %89 = vector.broadcast %88 : vector<1x32xf32> to vector<32x32xf32>
    %90 = arith.addf %87, %89 : vector<32x32xf32>
    %91 = arith.addf %78, %90 : vector<32x32xf32>
    %c0_47 = arith.constant 0 : index
    %c0_48 = arith.constant 0 : index
    %92 = vector.load %arg12[%c0_47, %c0_48] : memref<1x32xf32, #tpu.memory_space<vmem>>, vector<1x32xf32>
    %c0_49 = arith.constant 0 : index
    %c0_50 = arith.constant 0 : index
    %93 = vector.load %arg13[%c0_49, %c0_50] : memref<1x32xf32, #tpu.memory_space<vmem>>, vector<1x32xf32>
    %cst_51 = arith.constant dense<0.000000e+00> : vector<32xf32>
    %94 = vector.multi_reduction <add>, %91, %cst_51 [1] : vector<32x32xf32> to vector<32xf32>
    %95 = vector.shape_cast %94 : vector<32xf32> to vector<32x1xf32>
    %cst_52 = arith.constant 3.200000e+01 : f32
    %96 = vector.broadcast %cst_52 : f32 to vector<32x1xf32>
    %97 = arith.divf %95, %96 : vector<32x1xf32>
    %98 = vector.broadcast %97 : vector<32x1xf32> to vector<32x32xf32>
    %99 = arith.subf %91, %98 : vector<32x32xf32>
    %100 = arith.mulf %99, %99 : vector<32x32xf32>
    %cst_53 = arith.constant dense<0.000000e+00> : vector<32xf32>
    %101 = vector.multi_reduction <add>, %100, %cst_53 [1] : vector<32x32xf32> to vector<32xf32>
    %102 = vector.shape_cast %101 : vector<32xf32> to vector<32x1xf32>
    %cst_54 = arith.constant 3.200000e+01 : f32
    %103 = vector.broadcast %cst_54 : f32 to vector<32x1xf32>
    %104 = arith.divf %102, %103 : vector<32x1xf32>
    %105 = vector.broadcast %97 : vector<32x1xf32> to vector<32x32xf32>
    %106 = arith.subf %91, %105 : vector<32x32xf32>
    %cst_55 = arith.constant 9.99999974E-6 : f32
    %107 = vector.broadcast %cst_55 : f32 to vector<32x1xf32>
    %108 = arith.addf %104, %107 : vector<32x1xf32>
    %109 = math.rsqrt %108 : vector<32x1xf32>
    %110 = vector.broadcast %109 : vector<32x1xf32> to vector<32x32xf32>
    %111 = arith.mulf %106, %110 : vector<32x32xf32>
    %112 = vector.broadcast %92 : vector<1x32xf32> to vector<32x32xf32>
    %113 = arith.mulf %111, %112 : vector<32x32xf32>
    %114 = vector.broadcast %93 : vector<1x32xf32> to vector<32x32xf32>
    %115 = arith.addf %113, %114 : vector<32x32xf32>
    %c0_56 = arith.constant 0 : index
    %c0_57 = arith.constant 0 : index
    %116 = vector.load %arg18[%c0_56, %c0_57] : memref<32x32xf32, #tpu.memory_space<vmem>>, vector<32x32xf32>
    tpu.vector_store %arg18[%c0_56, %c0_57], %115 {strides = array<i32>} : memref<32x32xf32, #tpu.memory_space<vmem>>, vector<32x32xf32>,
    return
  }
}

</mosaic_0001>

<bundles_post_ra>
// kernel: tpu_custom_call.1
= control target key start
LH: loop header
LB: loop body
LE: loop exit
PB: predicated region body
PF: predicated region fallthrough
CT: control target
= control target key end

     0   :  { %s4238_s0 = inlined_call_operand.vmem [shape: f32[32,32], index: 0, kind: input, shape index: {}]   ;;  %s4239_s1 = inlined_call_operand.vmem [shape: f32[32,32], index: 1, kind: input, shape index: {}]   ;;  %s4240_s2 = inlined_call_operand.vmem [shape: f32[32,32], index: 2, kind: input, shape index: {}]   ;;  %s4241_s3 = inlined_call_operand.vmem [shape: f32[32,32], index: 3, kind: input, shape index: {}]   ;;  %s4242_s4 = inlined_call_operand.vmem [shape: f32[32,32], index: 4, kind: input, shape index: {}]   ;;  %s4243_s5 = inlined_call_operand.vmem [shape: f32[1,32], index: 5, kind: input, shape index: {}]   ;;  %s4244_s6 = inlined_call_operand.vmem [shape: f32[1,32], index: 6, kind: input, shape index: {}]   ;;  %s4245_s7 = inlined_call_operand.vmem [shape: f32[1,32], index: 7, kind: input, shape index: {}]   ;;  %s4246_s8 = inlined_call_operand.hbm [shape: f32[32,32], index: 8, kind: input, shape index: {}]   ;;  %s4247_s9 = inlined_call_operand.vmem [shape: f32[1,32], index: 9, kind: input, shape index: {}]   ;;  %s4248_s10 = inlined_call_operand.vmem [shape: f32[1,32], index: 10, kind: input, shape index: {}]   ;;  %s4249_s11 = inlined_call_operand.vmem [shape: f32[1,32], index: 11, kind: input, shape index: {}]   ;;  %s4250_s12 = inlined_call_operand.vmem [shape: f32[1,32], index: 12, kind: input, shape index: {}]   ;;  %s4251_s13 = inlined_call_operand.vmem [shape: f32[1,32], index: 13, kind: input, shape index: {}]   ;;  %s4252_s14 = inlined_call_operand.hbm [shape: f32[32,128], index: 14, kind: input, shape index: {}]   ;;  %s4253_s15 = inlined_call_operand.vmem [shape: f32[1,128], index: 15, kind: input, shape index: {}]   ;;  %s4254_s16 = inlined_call_operand.vmem [shape: f32[128,32], index: 16, kind: input, shape index: {}]   ;;  %s4255_s17 = inlined_call_operand.vmem [shape: f32[1,32], index: 17, kind: input, shape index: {}]   ;;  %s4256_s18 = inlined_call_operand.hbm [shape: f32[32,32], index: 18, kind: output, shape index: {}]  }
   0x1   :  { %4264 = sst [smem:[#allocation15_spill]] %s4238_s0 }
   0x2   :  { %4265 = sst [smem:[#allocation16_spill]] %s4239_s1 }
   0x3   :  { %4266 = sst [smem:[#allocation17_spill]] %s4240_s2 }
   0x4   :  { %23 = vsyncpa [#allocation3], 0 }
   0x5   :  { %24 = vsyncpa [#allocation6], 0 }
   0x6   :  { %25 = vsyncpa [#allocation4], 0  ;;  %s46_s29 = sshll.u32 %s4246_s8, 4  ;;  %s2382_s30 = smov [#allocation2]   ;;  %s47_s29 = int_to_ptr.hbm [resolvable:$true] %s46_s29 }
   0x7   :  { %s48_s0 = sshll.u32 %s2382_s30, 4  ;;  %s69_s20 = sshll.u32 %s4252_s14, 4  ;;  %s49_s0 = int_to_ptr.vmem [resolvable:$true] %s48_s0  ;;  %s70_s20 = int_to_ptr.hbm [resolvable:$true] %s69_s20 }
   0x8   :  { %s2383_s21 = smov 128   ;;  %s2384_s22 = smov 8  }
   0x9   :  { %54 = dma.hbm_to_vmem [thread:$0]  %s47_s29, 512, %s49_s0, [#allocation3], %s2383_s21, %s2383_s21, %s2384_s22  }
   0xa   :  { %s2385_s2 = smov [#allocation5]  }
   0xb   :  { %s71_s23 = sshll.u32 %s2385_s2, 4  ;;  %s72_s23 = int_to_ptr.vmem [resolvable:$true] %s71_s23 }
   0xc   :  { %77 = dma.hbm_to_vmem [thread:$0]  %s70_s20, 512, %s72_s23, [#allocation6], %s2383_s21, %s2383_s21, %s2384_s22  }
   0xd   :  { %2376 = dma.done.wait [#allocation3], 512  }
   0xe   :  { %2377 = vsyncadd [#allocation3], 4294966784 }
   0xf   :  { %2378 = dma.done.wait [#allocation6], 512  }
  0x10   :  { %2379 = vsyncadd [#allocation6], 4294966784  ;;  %v151_v0 = vld [vmem:[%s4241_s3 + $0x18] sm:$0xff]  ;;  %v150_v1 = vld [vmem:[%s4241_s3 + $0x10] sm:$0xff]  ;;  %s4267_s28 = sld [smem:[#allocation15_spill]]  ;;  %vm106_vm0 = vcmask 261120  }
  0x11   :  { %174 = vmatpush.msra.mxu1 %v151_v0  ;;  %v149_v4 = vld [vmem:[%s4241_s3 + $0x8] sm:$0xff]  ;;  %s4268_s2 = sld [smem:[#allocation17_spill]]  ;;  %v148_v7 = vld [vmem:[%s4241_s3] sm:$0xff]  ;;  %v188_v11 = vld [vmem:[%s4242_s4 + $0x18] sm:$0xff]  ;;  %s2388_s24 = smov 104   ;;  %vm363_vm1 = vcmask 1047556  }
  0x12   :  { %v187_v12 = vld [vmem:[%s4242_s4 + $0x10] sm:$0xff]  ;;  %v186_v13 = vld [vmem:[%s4242_s4 + $0x8] sm:$0xff]  ;;  %205 = vmatpush.msra.mxu3 %v188_v11  ;;  %v185_v16 = vld [vmem:[%s4242_s4] sm:$0xff]  ;;  %s4269_s30 = sld [smem:[#allocation16_spill]]  ;;  %vm587_vm2 = vcmask 60416   ;;  %s2391_s25 = smov 24  }
  0x13   :  { %175 = vmatpush.msra.mxu1 %v150_v1  ;;  %v2144_v18 = vld [vmem:[%s4244_s6] ss:$0 sm:$0xff]  ;;  %s2392_s26 = smov 16   ;;  %s2085_s1 = sshll.u32 %s4256_s18, 4  ;;  %s2086_s1 = int_to_ptr.hbm [resolvable:$true] %s2085_s1 }
  0x14   :  { %206 = vmatpush.msra.mxu3 %v187_v12  ;;  %v2146_v28 = vld [vmem:[%s4245_s7] ss:$0 sm:$0xff]  ;;  %s2387_s7 = smov 112  }
  0x15   :  { %176 = vmatpush.msra.mxu1 %v149_v4  ;;  %v2145_v34 = vld [vmem:[%s4243_s5] ss:$0 sm:$0xff]  ;;  %s2386_s5 = smov 120  }
  0x16   :  { %v92_v2 = vld [vmem:[%s4267_s28] sm:$0xff]  ;;  %v93_v3 = vld [vmem:[%s4267_s28 + $0x8] sm:$0xff]  ;;  %v94_v14 = vld [vmem:[%s4267_s28 + $0x10] sm:$0xff]  ;;  %207 = vmatpush.msra.mxu3 %v186_v13 }
  0x17   :  { %v101_v5 = vld [vmem:[%s4268_s2 + $0x18] sm:$0xff]  ;;  %v100_v6 = vld [vmem:[%s4268_s2 + $0x10] sm:$0xff]  ;;  %v96_v8 = vsub.f32 %v93_v3, %v92_v2  ;;  %v99_v9 = vld [vmem:[%s4268_s2 + $0x8] sm:$0xff]  ;;  %177 = vmatpush.msra.mxu1 %v148_v7 }
  0x18   :  { %131 = vmatpush.msra.mxu0 %v101_v5  ;;  %v98_v10 = vld [vmem:[%s4268_s2] sm:$0xff]  ;;  %v95_v15 = vld [vmem:[%s4267_s28 + $0x18] sm:$0xff]  ;;  %208 = vmatpush.msra.mxu3 %v185_v16  ;;  %v218_v24 = vld [vmem:[%s4269_s30 + $0x10] sm:$0xff] }
  0x19   :  { %2103 = vmatmul.msk.f32.vlgmr.msra.gmra.mxu1 %vm106_vm0, %v96_v8  ;;  %v97_v17 = vsub.f32 %v95_v15, %v94_v14  ;;  %2105 = vmatmul.msk.f32.vlgmr.msra.gmra.mxu3 %vm106_vm0, %v96_v8  ;;  %v219_v20 = vld [vmem:[%s4269_s30 + $0x18] sm:$0xff]  ;;  %v217_v27 = vld [vmem:[%s4269_s30 + $0x8] sm:$0xff]  ;;  %v216_v35 = vld [vmem:[%s4269_s30] sm:$0xff] }
  0x1a   :  { %132 = vmatpush.msra.mxu0 %v100_v6 }
  0x1c   :  { %133 = vmatpush.msra.mxu0 %v99_v9 }
  0x1e   :  { %134 = vmatpush.msra.mxu0 %v98_v10  ;;  %v2390_v10 = vmov 1934713408  }
  0x1f   :  { %2099 = vmatmul.msk.f32.vlgmr.msra.gmra.mxu0 %vm106_vm0, %v92_v2  ;;  %v2389_v2 = vmov 1983009808   ;;  %v392_v11 = vunpack.c.l.s4 %v2390_v10 }
  0x21   :  { %2104 = vmatmul.msk.f32.gmra.mxu1 %vm106_vm0, %v97_v17  ;;  %2106 = vmatmul.msk.f32.gmra.mxu3 %vm106_vm0, %v97_v17 }
  0x27   :  { %2100 = vmatmul.msk.f32.gmra.mxu0 %vm106_vm0, %v93_v3  ;;  %v368_v3 = vunpack.c.l.s4 %v2389_v2 }
  0x29   :  { %v2607_v8 = vunpack.c.0.s8 %v368_v3 }
  0x2f   :  { %2101 = vmatmul.msk.f32.gmra.mxu0 %vm106_vm0, %v94_v14 }
  0x37   :  { %2102 = vmatmul.msk.f32.gmra.mxu0 %vm106_vm0, %v95_v15 }
  0x96   :  { %v179_v19 = vpop.f32.mrf.mxu1 }
  0x97   :  { %v180_v21 = vadd.f32 %v2144_v18, %v179_v19  ;;  %v2614_v19 = vunpack.c.0.s8 %v392_v11 }
  0x99   :  { %v223_v23 = vmul.f32 %v219_v20, %v180_v21  ;;  %v222_v25 = vmul.f32 %v218_v24, %v180_v21  ;;  %v221_v30 = vmul.f32 %v217_v27, %v180_v21  ;;  %v220_v40 = vmul.f32 %v216_v35, %v180_v21 }
  0x9b   :  { %2107 = vmatpush.xpose.msk.msrb.mxu3 %vm106_vm0, %v223_v23 }
  0x9c   :  { %v136_v22 = vpop.f32.mrf.mxu0  ;;  %v210_v33 = vpop.f32.mrf.mxu3 }
  0x9d   :  { %v211_v36 = vadd.f32 %v2146_v28, %v210_v33  ;;  %v137_v41 = vadd.f32 %v2145_v34, %v136_v22 }
  0x9e   :  { %v182_v26 = vpop.f32.mrf.mxu1 }
  0x9f   :  { %v183_v29 = vadd.f32 %v2144_v18, %v182_v26  ;;  %2108 = vmatpush.xpose.msk.msrb.mxu3 %vm106_vm0, %v222_v25  ;;  %v231_v38 = vmul.f32 %v219_v20, %v211_v36  ;;  %v230_v39 = vmul.f32 %v218_v24, %v211_v36  ;;  %v229_v42 = vmul.f32 %v217_v27, %v211_v36 }
  0xa0   :  { %v228_v44 = vmul.f32 %v216_v35, %v211_v36 }
  0xa1   :  { %v227_v31 = vmul.f32 %v219_v20, %v183_v29  ;;  %v226_v37 = vmul.f32 %v218_v24, %v183_v29  ;;  %1661 = vmatpush.msra.mxu2 %v231_v38  ;;  %v225_v43 = vmul.f32 %v217_v27, %v183_v29  ;;  %v224_v48 = vmul.f32 %v216_v35, %v183_v29 }
  0xa3   :  { %2109 = vmatpush.xpose.msk.msrb.mxu3 %vm106_vm0, %v221_v30  ;;  %2113 = vmatpush.xpose.msk.msrb.mxu1 %vm106_vm0, %v227_v31 }
  0xa4   :  { %v139_v32 = vpop.f32.mrf.mxu0  ;;  %1662 = vmatpush.msra.mxu2 %v230_v39  ;;  %v213_v45 = vpop.f32.mrf.mxu3 }
  0xa5   :  { %v214_v46 = vadd.f32 %v2146_v28, %v213_v45  ;;  %v140_v51 = vadd.f32 %v2145_v34, %v139_v32 }
  0xa6   :  { %1663 = vmatpush.msra.mxu2 %v229_v42 }
  0xa7   :  { %2110 = vmatpush.xpose.msk.msrb.mxu3 %vm106_vm0, %v220_v40  ;;  %2114 = vmatpush.xpose.msk.msrb.mxu1 %vm106_vm0, %v226_v37  ;;  %v235_v49 = vmul.f32 %v219_v20, %v214_v46  ;;  %v234_v50 = vmul.f32 %v218_v24, %v214_v46  ;;  %v233_v53 = vmul.f32 %v217_v27, %v214_v46 }
  0xa8   :  { %1664 = vmatpush.msra.mxu2 %v228_v44  ;;  %v232_v54 = vmul.f32 %v216_v35, %v214_v46 }
  0xaa   :  { %2111 = vmatmul.msk.f32.vlgmr.msrb.gmra.mxu3 %vm106_vm0, %v137_v41 }
  0xab   :  { %2115 = vmatpush.xpose.msk.msrb.mxu1 %vm106_vm0, %v225_v43  ;;  %1690 = vmatpush.msra.mxu3 %v235_v49 }
  0xac   :  { %v142_v47 = vpop.f32.mrf.mxu0 }
  0xad   :  { %v143_v52 = vadd.f32 %v2145_v34, %v142_v47  ;;  %1691 = vmatpush.msra.mxu3 %v234_v50 }
  0xaf   :  { %2116 = vmatpush.xpose.msk.msrb.mxu1 %vm106_vm0, %v224_v48  ;;  %1692 = vmatpush.msra.mxu3 %v233_v53 }
  0xb1   :  { %1693 = vmatpush.msra.mxu3 %v232_v54 }
  0xb2   :  { %2117 = vmatmul.msk.f32.vlgmr.msrb.gmra.mxu1 %vm106_vm0, %v143_v52  ;;  %2112 = vmatmul.msk.f32.gmra.mxu3 %vm106_vm0, %v140_v51 }
  0xb4   :  { %v145_v55 = vpop.f32.mrf.mxu0 }
  0xb5   :  { %v146_v56 = vadd.f32 %v2145_v34, %v145_v55 }
  0xba   :  { %2118 = vmatmul.msk.f32.gmra.mxu1 %vm106_vm0, %v146_v56 }
 0x12d   :  { %v271_v57 = vpop.f32.mrf.mxu3 }
 0x12e   :  { %v318_v58 = vmul.f32 0.35355338, %v271_v57 }
 0x12f   :  { %v312_v59 = vpop.f32.mrf.mxu1 }
 0x130   :  { %v2591_v60 = vmul.f32 0.35355338, %v312_v59  ;;  %326 = vrot.lane.b32.xlu1 %v318_v58, %s2386_s5  ;;  %338 = vrot.lane.b32.xlu0 %v318_v58, %s2387_s7  ;;  %v365_v6 = vrot.slane %v318_v58, 4 }
 0x132   :  { %330 = vrot.lane.b32.xlu2 %v2591_v60, %s2386_s5  ;;  %v477_v32 = vrot.slane %v2591_v60, 4 }
 0x135   :  { %v274_v61 = vpop.f32.mrf.mxu3 }
 0x136   :  { %v2594_v62 = vmul.f32 0.35355338, %v274_v61 }
 0x137   :  { %v315_v63 = vpop.f32.mrf.mxu1 }
 0x138   :  { %354 = vrot.lane.b32.xlu1 %v2591_v60, %s2388_s24  ;;  %350 = vrot.lane.b32.xlu0 %v318_v58, %s2388_s24  ;;  %v2601_v0 = vmul.f32 0.35355338, %v315_v63 }
 0x13a   :  { %352 = vrot.lane.b32.xlu2 %v2594_v62, %s2388_s24 }
 0x140   :  { %342 = vrot.lane.b32.xlu0 %v2591_v60, %s2387_s7  ;;  %340 = vrot.lane.b32.xlu1 %v2594_v62, %s2387_s7 }
 0x142   :  { %328 = vrot.lane.b32.xlu2 %v2594_v62, %s2386_s5 }
 0x148   :  { %344 = vrot.lane.b32.xlu0 %v2601_v0, %s2387_s7  ;;  %356 = vrot.lane.b32.xlu1 %v2601_v0, %s2388_s24 }
 0x14a   :  { %332 = vrot.lane.b32.xlu2 %v2601_v0, %s2386_s5 }
 0x18c   :  { %v331_v29 = vpop.permute.xlu2 %330 }
 0x18d   :  { %v489_v34 = vrot.slane %v331_v29, 4 }
 0x194   :  { %v353_v3 = vpop.permute.xlu2 %352 }
 0x1a2   :  { %v339_v1 = vpop.permute.xlu0 %338  ;;  %v327_v5 = vpop.permute.xlu1 %326 }
 0x1a3   :  { %v362_v4 = vrot.slane %v339_v1, 4  ;;  %v366_v7 = vsel %vm363_vm1, %v339_v1, %v365_v6  ;;  %v377_v12 = vrot.slane %v327_v5, 4 }
 0x1a4   :  { %v374_v13 = vperm.slane %v366_v7, %v2607_v8 }
 0x1a5   :  { %v364_v9 = vsel %vm363_vm1, %v362_v4, %v318_v58 }
 0x1a6   :  { %v370_v14 = vperm.slane %v364_v9, %v2607_v8  ;;  %v401_v20 = vrot.slane %v374_v13, 4 }
 0x1a8   :  { %v389_v22 = vrot.slane %v370_v14, 4 }
 0x1aa   :  { %v351_v15 = vpop.permute.xlu0 %350  ;;  %v355_v23 = vpop.permute.xlu1 %354 }
 0x1ab   :  { %v375_v16 = vrot.slane %v351_v15, 4  ;;  %v378_v17 = vsel %vm363_vm1, %v351_v15, %v377_v12  ;;  %v487_v30 = vrot.slane %v355_v23, 4  ;;  %v490_v41 = vsel %vm363_vm1, %v355_v23, %v489_v34 }
 0x1ac   :  { %v386_v18 = vperm.slane %v378_v17, %v2607_v8  ;;  %v498_v51 = vperm.slane %v490_v41, %v2607_v8  ;;  %v431_v23 = vrot.slane %v353_v3, 4 }
 0x1ad   :  { %v376_v21 = vsel %vm363_vm1, %v375_v16, %v327_v5  ;;  %v488_v45 = vsel %vm363_vm1, %v487_v30, %v331_v29 }
 0x1ae   :  { %v382_v24 = vperm.slane %v376_v21, %v2607_v8  ;;  %v399_v25 = vrot.slane %v386_v18, 4  ;;  %v402_v26 = vsel %vm363_vm1, %v386_v18, %v401_v20  ;;  %v494_v53 = vperm.slane %v488_v45, %v2607_v8  ;;  %v329_v21 = vpop.permute.xlu2 %328 }
 0x1af   :  { %v2620_v27 = vperm.slane %v402_v26, %v2614_v19  ;;  %v511_v58 = vrot.slane %v498_v51, 4  ;;  %v421_v18 = vrot.slane %v2594_v62, 4  ;;  %v433_v29 = vrot.slane %v329_v21, 4 }
 0x1b0   :  { %v390_v28 = vsel %vm363_vm1, %v382_v24, %v389_v22  ;;  %v387_v31 = vrot.slane %v382_v24, 4  ;;  %v400_v40 = vsel %vm363_vm1, %v399_v25, %v374_v13  ;;  %v499_v1 = vrot.slane %v494_v53, 4 }
 0x1b1   :  { %v2625_v33 = vperm.slane %v390_v28, %v2614_v19  ;;  %v606_v36 = vsel %vm587_vm2, %v2620_v27, -inf  ;;  %v417_v37 = vrot.slane %v2620_v27, 4  ;;  %v2647_v50 = vperm.slane %v400_v40, %v2614_v19 }
 0x1b2   :  { %v343_v35 = vpop.permute.xlu0 %342  ;;  %607 = vmax.xlane.f32.xlu1 %v606_v36  ;;  %v388_v48 = vsel %vm363_vm1, %v387_v31, %v370_v14  ;;  %v341_v7 = vpop.permute.xlu1 %340  ;;  %v432_v34 = vsel %vm363_vm1, %v431_v23, %v329_v21 }
 0x1b3   :  { %v475_v38 = vrot.slane %v343_v35, 4  ;;  %v478_v39 = vsel %vm363_vm1, %v343_v35, %v477_v32  ;;  %v594_v43 = vsel %vm587_vm2, %v2625_v33, -inf  ;;  %v2637_v44 = vsel %vm363_vm1, 0.0, %v417_v37 }
 0x1b4   :  { %v486_v42 = vperm.slane %v478_v39, %v2607_v8  ;;  %595 = vmax.xlane.f32.xlu2 %v594_v43  ;;  %v609_v47 = vsel %vm587_vm2, %v2637_v44, -inf  ;;  %v2652_v55 = vperm.slane %v388_v48, %v2614_v19  ;;  %v600_v56 = vsel %vm587_vm2, %v2647_v50, -inf }
 0x1b5   :  { %v476_v46 = vsel %vm363_vm1, %v475_v38, %v2591_v60  ;;  %610 = vmax.xlane.f32.xlu0 %v609_v47  ;;  %v419_v12 = vrot.slane %v341_v7, 4  ;;  %v413_v20 = vrot.slane %v2625_v33, 4  ;;  %v422_v24 = vsel %vm363_vm1, %v341_v7, %v421_v18 }
 0x1b6   :  { %v482_v49 = vperm.slane %v476_v46, %v2607_v8  ;;  %v513_v52 = vrot.slane %v486_v42, 4  ;;  %v588_v60 = vsel %vm587_vm2, %v2652_v55, -inf  ;;  %v512_v63 = vsel %vm363_vm1, %v511_v58, %v486_v42  ;;  %v333_v42 = vpop.permute.xlu2 %332 }
 0x1b7   :  { %v2670_v5 = vperm.slane %v512_v63, %v2614_v19  ;;  %v411_v14 = vrot.slane %v2652_v55, 4  ;;  %v420_v17 = vsel %vm363_vm1, %v419_v12, %v2594_v62  ;;  %v2702_v30 = vsel %vm363_vm1, 0.0, %v413_v20 }
 0x1b8   :  { %v501_v54 = vrot.slane %v482_v49, 4  ;;  %v514_v59 = vsel %vm363_vm1, %v498_v51, %v513_v52  ;;  %v500_v6 = vsel %vm363_vm1, %v499_v1, %v482_v49  ;;  %v426_v26 = vperm.slane %v420_v17, %v2607_v8 }
 0x1b9   :  { %v2665_v2 = vperm.slane %v514_v59, %v2614_v19  ;;  %v2676_v10 = vperm.slane %v500_v6, %v2614_v19  ;;  %v648_v13 = vsel %vm587_vm2, %v2670_v5, -inf  ;;  %v2692_v22 = vsel %vm363_vm1, 0.0, %v411_v14 }
 0x1ba   :  { %v502_v57 = vsel %vm363_vm1, %v494_v53, %v501_v54  ;;  %601 = vmax.xlane.f32.xlu1 %v600_v56  ;;  %v527_v28 = vrot.slane %v2670_v5, 4  ;;  %v591_v62 = vsel %vm587_vm2, %v2692_v22, -inf  ;;  %v430_v31 = vperm.slane %v422_v24, %v2607_v8  ;;  %v345_v47 = vpop.permute.xlu0 %344  ;;  %v357_v53 = vpop.permute.xlu1 %356 }
 0x1bb   :  { %v2661_v61 = vperm.slane %v502_v57, %v2614_v19  ;;  %v654_v9 = vsel %vm587_vm2, %v2665_v2, -inf  ;;  %v529_v11 = vrot.slane %v2665_v2, 4  ;;  %v636_v15 = vsel %vm587_vm2, %v2676_v10, -inf }
 0x1bc   :  { %589 = vmax.xlane.f32.xlu2 %v588_v60  ;;  %v523_v32 = vrot.slane %v2676_v10, 4  ;;  %v445_v35 = vrot.slane %v426_v26, 4  ;;  %v597_v36 = vsel %vm587_vm2, %v2702_v30, -inf  ;;  %v2710_v37 = vsel %vm363_vm1, 0.0, %v527_v28 }
 0x1bd   :  { %v642_v4 = vsel %vm587_vm2, %v2661_v61, -inf  ;;  %v2685_v16 = vsel %vm363_vm1, 0.0, %v529_v11  ;;  %v434_v38 = vsel %vm363_vm1, %v353_v3, %v433_v29  ;;  %v415_v39 = vrot.slane %v2647_v50, 4 }
 0x1be   :  { %643 = vmax.xlane.f32.xlu0 %v642_v4  ;;  %v657_v25 = vsel %vm587_vm2, %v2685_v16, -inf  ;;  %v438_v40 = vperm.slane %v432_v34, %v2607_v8  ;;  %v457_v41 = vrot.slane %v430_v31, 4  ;;  %v2716_v43 = vsel %vm363_vm1, 0.0, %v523_v32 }
 0x1bf   :  { %v651_v45 = vsel %vm587_vm2, %v2710_v37, -inf  ;;  %v442_v46 = vperm.slane %v434_v38, %v2607_v8  ;;  %v545_v49 = vrot.slane %v333_v42, 4  ;;  %v639_v51 = vsel %vm587_vm2, %v2716_v43, -inf }
 0x1c0   :  { %v446_v48 = vsel %vm363_vm1, %v438_v40, %v445_v35  ;;  %v2725_v52 = vsel %vm363_vm1, 0.0, %v415_v39  ;;  %v531_v56 = vrot.slane %v345_v47, 4  ;;  %v525_v63 = vrot.slane %v2661_v61, 4 }
 0x1c1   :  { %v458_v54 = vsel %vm363_vm1, %v442_v46, %v457_v41  ;;  %v2729_v57 = vperm.slane %v446_v48, %v2614_v19  ;;  %v603_v58 = vsel %vm587_vm2, %v2725_v52, -inf  ;;  %v546_v59 = vsel %vm363_vm1, %v357_v53, %v545_v49 }
 0x1c2   :  { %655 = vmax.xlane.f32.xlu1 %v654_v9  ;;  %v2735_v60 = vperm.slane %v458_v54, %v2614_v19  ;;  %v443_v1 = vrot.slane %v438_v40, 4  ;;  %v532_v3 = vsel %vm363_vm1, %v531_v56, %v2601_v0  ;;  %v533_v6 = vrot.slane %v2601_v0, 4 }
 0x1c3   :  { %v618_v4 = vsel %vm587_vm2, %v2729_v57, -inf  ;;  %v554_v7 = vperm.slane %v546_v59, %v2607_v8  ;;  %v543_v11 = vrot.slane %v357_v53, 4  ;;  %v455_v0 = vrot.slane %v442_v46, 4 }
 0x1c4   :  { %649 = vmax.xlane.f32.xlu2 %v648_v13  ;;  %v444_v9 = vsel %vm363_vm1, %v443_v1, %v426_v26  ;;  %v630_v12 = vsel %vm587_vm2, %v2735_v60, -inf  ;;  %v2748_v13 = vsel %vm363_vm1, 0.0, %v525_v63  ;;  %v534_v14 = vsel %vm363_vm1, %v345_v47, %v533_v6 }
 0x1c5   :  { %v473_v17 = vrot.slane %v2735_v60, 4  ;;  %v2754_v18 = vperm.slane %v444_v9, %v2614_v19  ;;  %v567_v20 = vrot.slane %v554_v7, 4  ;;  %v645_v21 = vsel %vm587_vm2, %v2748_v13, -inf }
 0x1c6   :  { %637 = vmax.xlane.f32.xlu0 %v636_v15  ;;  %v538_v15 = vperm.slane %v532_v3, %v2607_v8  ;;  %v542_v23 = vperm.slane %v534_v14, %v2607_v8  ;;  %v544_v24 = vsel %vm363_vm1, %v543_v11, %v333_v42  ;;  %v469_v47 = vrot.slane %v2729_v57, 4 }
 0x1c7   :  { %v2762_v28 = vsel %vm363_vm1, 0.0, %v473_v17  ;;  %v612_v29 = vsel %vm587_vm2, %v2754_v18, -inf  ;;  %v467_v56 = vrot.slane %v2754_v18, 4 }
 0x1c8   :  { %v557_v26 = vrot.slane %v538_v15, 4  ;;  %v568_v34 = vsel %vm363_vm1, %v567_v20, %v542_v23  ;;  %v569_v35 = vrot.slane %v542_v23, 4  ;;  %v2795_v53 = vsel %vm363_vm1, 0.0, %v469_v47 }
 0x1c9   :  { %v2775_v38 = vperm.slane %v568_v34, %v2614_v19  ;;  %v2807_v1 = vsel %vm363_vm1, 0.0, %v467_v56 }
 0x1ca   :  { %658 = vmax.xlane.f32.xlu1 %v657_v25  ;;  %v456_v25 = vsel %vm363_vm1, %v455_v0, %v430_v31  ;;  %v570_v42 = vsel %vm363_vm1, %v554_v7, %v569_v35 }
 0x1cb   :  { %v2768_v32 = vperm.slane %v456_v25, %v2614_v19  ;;  %v2786_v46 = vperm.slane %v570_v42, %v2614_v19  ;;  %v583_v0 = vrot.slane %v2775_v38, 4 }
 0x1cc   :  { %592 = vmax.xlane.f32.xlu2 %v591_v62  ;;  %v550_v62 = vperm.slane %v544_v24, %v2607_v8 }
 0x1cd   :  { %v624_v39 = vsel %vm587_vm2, %v2768_v32, -inf  ;;  %v471_v3 = vrot.slane %v2768_v32, 4  ;;  %v585_v7 = vrot.slane %v2786_v46, 4  ;;  %v2836_v23 = vsel %vm363_vm1, 0.0, %v583_v0 }
 0x1ce   :  { %598 = vmax.xlane.f32.xlu0 %v597_v36  ;;  %v633_v36 = vsel %vm587_vm2, %v2762_v28, -inf  ;;  %v558_v31 = vsel %vm363_vm1, %v550_v62, %v557_v26  ;;  %v555_v40 = vrot.slane %v550_v62, 4  ;;  %v675_v24 = vsel %vm587_vm2, %v2836_v23, -inf }
 0x1cf   :  { %v2780_v41 = vperm.slane %v558_v31, %v2614_v19  ;;  %v2817_v9 = vsel %vm363_vm1, 0.0, %v471_v3  ;;  %v2824_v14 = vsel %vm363_vm1, 0.0, %v585_v7 }
 0x1d0   :  { %v556_v49 = vsel %vm363_vm1, %v555_v40, %v538_v15  ;;  %v681_v17 = vsel %vm587_vm2, %v2824_v14, -inf }
 0x1d1   :  { %v666_v48 = vsel %vm587_vm2, %v2780_v41, -inf  ;;  %v2798_v54 = vperm.slane %v556_v49, %v2614_v19  ;;  %v581_v15 = vrot.slane %v2780_v41, 4 }
 0x1d2   :  { %652 = vmax.xlane.f32.xlu1 %v651_v45  ;;  %v672_v45 = vsel %vm587_vm2, %v2775_v38, -inf }
 0x1d3   :  { %v579_v59 = vrot.slane %v2798_v54, 4  ;;  %v660_v63 = vsel %vm587_vm2, %v2798_v54, -inf  ;;  %v2831_v20 = vsel %vm363_vm1, 0.0, %v581_v15 }
 0x1d4   :  { %640 = vmax.xlane.f32.xlu2 %v639_v51  ;;  %v678_v51 = vsel %vm587_vm2, %v2786_v46, -inf }
 0x1d5   :  { %v2813_v6 = vsel %vm363_vm1, 0.0, %v579_v59 }
 0x1d6   :  { %604 = vmax.xlane.f32.xlu0 %v603_v58  ;;  %v621_v58 = vsel %vm587_vm2, %v2795_v53, -inf  ;;  %v663_v11 = vsel %vm587_vm2, %v2813_v6, -inf }
 0x1da   :  { %619 = vmax.xlane.f32.xlu1 %v618_v4  ;;  %v615_v4 = vsel %vm587_vm2, %v2807_v1, -inf }
 0x1dc   :  { %631 = vmax.xlane.f32.xlu2 %v630_v12  ;;  %v627_v12 = vsel %vm587_vm2, %v2817_v9, -inf }
 0x1de   :  { %646 = vmax.xlane.f32.xlu0 %v645_v21  ;;  %v669_v21 = vsel %vm587_vm2, %v2831_v20, -inf }
 0x1e2   :  { %613 = vmax.xlane.f32.xlu1 %v612_v29 }
 0x1e4   :  { %634 = vmax.xlane.f32.xlu2 %v633_v36 }
 0x1e6   :  { %625 = vmax.xlane.f32.xlu0 %v624_v39 }
 0x1ea   :  { %673 = vmax.xlane.f32.xlu1 %v672_v45 }
 0x1ec   :  { %667 = vmax.xlane.f32.xlu2 %v666_v48 }
 0x1ee   :  { %679 = vmax.xlane.f32.xlu0 %v678_v51 }
 0x1f2   :  { %622 = vmax.xlane.f32.xlu1 %v621_v58 }
 0x1f4   :  { %661 = vmax.xlane.f32.xlu2 %v660_v63 }
 0x1f6   :  { %616 = vmax.xlane.f32.xlu0 %v615_v4 }
 0x1fa   :  { %664 = vmax.xlane.f32.xlu1 %v663_v11 }
 0x1fc   :  { %628 = vmax.xlane.f32.xlu2 %v627_v12 }
 0x1fe   :  { %682 = vmax.xlane.f32.xlu0 %v681_v17 }
 0x204   :  { %670 = vmax.xlane.f32.xlu2 %v669_v21 }
 0x206   :  { %676 = vmax.xlane.f32.xlu0 %v675_v24 }
 0x225   :  { %v608_v25 = vpop.xlane.xlu1 %607 }
 0x226   :  { %v690_v26 = vsub.f32 %v2620_v27, %v608_v25 }
 0x227   :  { %v596_v29 = vpop.xlane.xlu2 %595 }
 0x228   :  { %v728_v62 = vmul.f32 1.442695, %v690_v26  ;;  %v686_v34 = vsub.f32 %v2625_v33, %v596_v29  ;;  %v611_v35 = vpop.xlane.xlu0 %610 }
 0x229   :  { %v691_v36 = vsub.f32 %v2637_v44, %v611_v35 }
 0x22a   :  { %2154 = vpow2.f32 %v728_v62  ;;  %v720_v31 = vmul.f32 1.442695, %v686_v34 }
 0x22b   :  { %v730_v39 = vmul.f32 1.442695, %v691_v36 }
 0x22c   :  { %2156 = vpow2.f32 %v720_v31 }
 0x22d   :  { %v602_v40 = vpop.xlane.xlu1 %601  ;;  %2158 = vpow2.f32 %v730_v39 }
 0x22e   :  { %v688_v42 = vsub.f32 %v2647_v50, %v602_v40 }
 0x22f   :  { %v590_v45 = vpop.xlane.xlu2 %589 }
 0x230   :  { %v2844_v47 = vpop.eup %2154  ;;  %v724_v48 = vmul.f32 1.442695, %v688_v42  ;;  %v684_v27 = vsub.f32 %v2652_v55, %v590_v45 }
 0x231   :  { %v798_v33 = vsel %vm587_vm2, %v2844_v47, 0.0  ;;  %v644_v51 = vpop.xlane.xlu0 %643 }
 0x232   :  { %v2849_v49 = vpop.eup %2156  ;;  %2160 = vpow2.f32 %v724_v48  ;;  %v716_v44 = vmul.f32 1.442695, %v684_v27  ;;  %799 = vadd.xlane.f32.xlu2 %v798_v33  ;;  %v702_v56 = vsub.f32 %v2661_v61, %v644_v51 }
 0x233   :  { %v786_v50 = vsel %vm587_vm2, %v2849_v49, 0.0  ;;  %v2854_v63 = vpop.eup %2158 }
 0x234   :  { %2162 = vpow2.f32 %v716_v44  ;;  %787 = vadd.xlane.f32.xlu1 %v786_v50  ;;  %v752_v58 = vmul.f32 1.442695, %v702_v56  ;;  %v801_v12 = vsel %vm587_vm2, %v2854_v63, 0.0 }
 0x235   :  { %v656_v59 = vpop.xlane.xlu1 %655 }
 0x236   :  { %v706_v55 = vsub.f32 %v2665_v2, %v656_v59  ;;  %2164 = vpow2.f32 %v752_v58 }
 0x237   :  { %v650_v3 = vpop.xlane.xlu2 %649 }
 0x238   :  { %v2857_v4 = vpop.eup %2160  ;;  %v760_v7 = vmul.f32 1.442695, %v706_v55  ;;  %v704_v11 = vsub.f32 %v2670_v5, %v650_v3 }
 0x239   :  { %v792_v61 = vsel %vm587_vm2, %v2857_v4, 0.0  ;;  %v638_v0 = vpop.xlane.xlu0 %637 }
 0x23a   :  { %v2864_v15 = vpop.eup %2162  ;;  %2166 = vpow2.f32 %v760_v7  ;;  %v756_v17 = vmul.f32 1.442695, %v704_v11  ;;  %793 = vadd.xlane.f32.xlu0 %v792_v61  ;;  %802 = vadd.xlane.f32.xlu2 %v801_v12  ;;  %v700_v2 = vsub.f32 %v2676_v10, %v638_v0 }
 0x23b   :  { %v780_v21 = vsel %vm587_vm2, %v2864_v15, 0.0 }
 0x23c   :  { %2168 = vpow2.f32 %v756_v17  ;;  %781 = vadd.xlane.f32.xlu1 %v780_v21  ;;  %v748_v5 = vmul.f32 1.442695, %v700_v2  ;;  %v2869_v25 = vpop.eup %2164 }
 0x23d   :  { %v659_v24 = vpop.xlane.xlu1 %658  ;;  %v834_v10 = vsel %vm587_vm2, %v2869_v25, 0.0 }
 0x23e   :  { %2170 = vpow2.f32 %v748_v5  ;;  %v707_v36 = vsub.f32 %v2685_v16, %v659_v24 }
 0x23f   :  { %v593_v26 = vpop.xlane.xlu2 %592 }
 0x240   :  { %v2871_v29 = vpop.eup %2166  ;;  %v685_v62 = vsub.f32 %v2692_v22, %v593_v26  ;;  %v762_v27 = vmul.f32 1.442695, %v707_v36 }
 0x241   :  { %v846_v34 = vsel %vm587_vm2, %v2871_v29, 0.0  ;;  %v599_v39 = vpop.xlane.xlu0 %598 }
 0x242   :  { %v2878_v35 = vpop.eup %2168  ;;  %v718_v31 = vmul.f32 1.442695, %v685_v62  ;;  %847 = vadd.xlane.f32.xlu0 %v846_v34  ;;  %835 = vadd.xlane.f32.xlu2 %v834_v10  ;;  %v687_v40 = vsub.f32 %v2702_v30, %v599_v39 }
 0x243   :  { %v840_v42 = vsel %vm587_vm2, %v2878_v35, 0.0 }
 0x244   :  { %2172 = vpow2.f32 %v718_v31  ;;  %841 = vadd.xlane.f32.xlu1 %v840_v42  ;;  %v722_v22 = vmul.f32 1.442695, %v687_v40  ;;  %v2884_v48 = vpop.eup %2170 }
 0x245   :  { %v653_v45 = vpop.xlane.xlu1 %652  ;;  %v828_v44 = vsel %vm587_vm2, %v2884_v48, 0.0 }
 0x246   :  { %2174 = vpow2.f32 %v722_v22  ;;  %v705_v30 = vsub.f32 %v2710_v37, %v653_v45 }
 0x247   :  { %v641_v33 = vpop.xlane.xlu2 %640  ;;  %2176 = vpow2.f32 %v762_v27 }
 0x248   :  { %v701_v16 = vsub.f32 %v2716_v43, %v641_v33  ;;  %v758_v7 = vmul.f32 1.442695, %v705_v30 }
 0x249   :  { %v605_v50 = vpop.xlane.xlu0 %604 }
 0x24a   :  { %v2889_v51 = vpop.eup %2172  ;;  %v750_v56 = vmul.f32 1.442695, %v701_v16  ;;  %829 = vadd.xlane.f32.xlu2 %v828_v44  ;;  %v689_v58 = vsub.f32 %v2725_v52, %v605_v50 }
 0x24b   :  { %v783_v59 = vsel %vm587_vm2, %v2889_v51, 0.0 }
 0x24c   :  { %784 = vadd.xlane.f32.xlu0 %v783_v59  ;;  %v2895_v55 = vpop.eup %2174  ;;  %2178 = vpow2.f32 %v750_v56  ;;  %v726_v43 = vmul.f32 1.442695, %v689_v58 }
 0x24d   :  { %v620_v3 = vpop.xlane.xlu1 %619  ;;  %v789_v11 = vsel %vm587_vm2, %v2895_v55, 0.0  ;;  %v2899_v61 = vpop.eup %2176 }
 0x24e   :  { %2180 = vpow2.f32 %v726_v43  ;;  %790 = vadd.xlane.f32.xlu1 %v789_v11  ;;  %v694_v12 = vsub.f32 %v2729_v57, %v620_v3  ;;  %v849_v5 = vsel %vm587_vm2, %v2899_v61, 0.0 }
 0x24f   :  { %v632_v37 = vpop.xlane.xlu2 %631  ;;  %2182 = vpow2.f32 %v758_v7 }
 0x250   :  { %v698_v52 = vsub.f32 %v2735_v60, %v632_v37  ;;  %v736_v34 = vmul.f32 1.442695, %v694_v12 }
 0x251   :  { %v647_v0 = vpop.xlane.xlu0 %646 }
 0x252   :  { %v744_v17 = vmul.f32 1.442695, %v698_v52  ;;  %v2903_v2 = vpop.eup %2178  ;;  %v703_v21 = vsub.f32 %v2748_v13, %v647_v0 }
 0x253   :  { %v831_v60 = vsel %vm587_vm2, %v2903_v2, 0.0 }
 0x254   :  { %850 = vadd.xlane.f32.xlu0 %v849_v5  ;;  %v2908_v24 = vpop.eup %2180  ;;  %2184 = vpow2.f32 %v744_v17  ;;  %v754_v26 = vmul.f32 1.442695, %v703_v21 }
 0x255   :  { %v614_v62 = vpop.xlane.xlu1 %613  ;;  %v795_v57 = vsel %vm587_vm2, %v2908_v24, 0.0  ;;  %v2914_v10 = vpop.eup %2182 }
 0x256   :  { %2186 = vpow2.f32 %v754_v26  ;;  %832 = vadd.xlane.f32.xlu1 %v831_v60  ;;  %796 = vadd.xlane.f32.xlu2 %v795_v57  ;;  %v692_v31 = vsub.f32 %v2754_v18, %v614_v62  ;;  %v843_v45 = vsel %vm587_vm2, %v2914_v10, 0.0 }
 0x257   :  { %v635_v13 = vpop.xlane.xlu2 %634  ;;  %2188 = vpow2.f32 %v736_v34 }
 0x258   :  { %v699_v36 = vsub.f32 %v2762_v28, %v635_v13  ;;  %v732_v44 = vmul.f32 1.442695, %v692_v31 }
 0x259   :  { %v626_v40 = vpop.xlane.xlu0 %625 }
 0x25a   :  { %v746_v39 = vmul.f32 1.442695, %v699_v36  ;;  %v2918_v42 = vpop.eup %2184  ;;  %v696_v22 = vsub.f32 %v2768_v32, %v626_v40 }
 0x25b   :  { %v822_v28 = vsel %vm587_vm2, %v2918_v42, 0.0 }
 0x25c   :  { %844 = vadd.xlane.f32.xlu0 %v843_v45  ;;  %v2923_v27 = vpop.eup %2186  ;;  %2190 = vpow2.f32 %v746_v39  ;;  %v740_v33 = vmul.f32 1.442695, %v696_v22 }
 0x25d   :  { %v674_v16 = vpop.xlane.xlu1 %673  ;;  %v837_v18 = vsel %vm587_vm2, %v2923_v27, 0.0  ;;  %v2929_v30 = vpop.eup %2188 }
 0x25e   :  { %2192 = vpow2.f32 %v740_v33  ;;  %823 = vadd.xlane.f32.xlu1 %v822_v28  ;;  %838 = vadd.xlane.f32.xlu2 %v837_v18  ;;  %v810_v43 = vsel %vm587_vm2, %v2929_v30, 0.0  ;;  %v712_v0 = vsub.f32 %v2775_v38, %v674_v16 }
 0x25f   :  { %v668_v32 = vpop.xlane.xlu2 %667  ;;  %2194 = vpow2.f32 %v732_v44 }
 0x260   :  { %v710_v56 = vsub.f32 %v2780_v41, %v668_v32  ;;  %v772_v60 = vmul.f32 1.442695, %v712_v0 }
 0x261   :  { %v680_v58 = vpop.xlane.xlu0 %679 }
 0x262   :  { %v768_v50 = vmul.f32 1.442695, %v710_v56  ;;  %v2932_v59 = vpop.eup %2190  ;;  %v714_v62 = vsub.f32 %v2786_v46, %v680_v58 }
 0x263   :  { %v825_v37 = vsel %vm587_vm2, %v2932_v59, 0.0 }
 0x264   :  { %811 = vadd.xlane.f32.xlu0 %v810_v43  ;;  %v2936_v3 = vpop.eup %2192  ;;  %2196 = vpow2.f32 %v768_v50 }
 0x265   :  { %v623_v7 = vpop.xlane.xlu1 %622  ;;  %v816_v41 = vsel %vm587_vm2, %v2936_v3, 0.0  ;;  %v2943_v12 = vpop.eup %2194 }
 0x266   :  { %v695_v11 = vsub.f32 %v2795_v53, %v623_v7  ;;  %826 = vadd.xlane.f32.xlu1 %v825_v37  ;;  %817 = vadd.xlane.f32.xlu2 %v816_v41  ;;  %v804_v26 = vsel %vm587_vm2, %v2943_v12, 0.0 }
 0x267   :  { %v662_v52 = vpop.xlane.xlu2 %661 }
 0x268   :  { %v738_v17 = vmul.f32 1.442695, %v695_v11  ;;  %v708_v56 = vsub.f32 %v2798_v54, %v662_v52 }
 0x269   :  { %v617_v21 = vpop.xlane.xlu0 %616 }
 0x26a   :  { %2198 = vpow2.f32 %v738_v17  ;;  %v2946_v5 = vpop.eup %2196  ;;  %v693_v53 = vsub.f32 %v2807_v1, %v617_v21  ;;  %v776_v1 = vmul.f32 1.442695, %v714_v62  ;;  %v764_v11 = vmul.f32 1.442695, %v708_v56 }
 0x26b   :  { %v858_v57 = vsel %vm587_vm2, %v2946_v5, 0.0 }
 0x26c   :  { %805 = vadd.xlane.f32.xlu0 %v804_v26  ;;  %v734_v34 = vmul.f32 1.442695, %v693_v53 }
 0x26d   :  { %v665_v13 = vpop.xlane.xlu1 %664 }
 0x26e   :  { %2200 = vpow2.f32 %v734_v34  ;;  %859 = vadd.xlane.f32.xlu1 %v858_v57  ;;  %v709_v39 = vsub.f32 %v2813_v6, %v665_v13 }
 0x26f   :  { %v629_v38 = vpop.xlane.xlu2 %628  ;;  %2202 = vpow2.f32 %v772_v60 }
 0x270   :  { %v2954_v36 = vpop.eup %2198  ;;  %v697_v31 = vsub.f32 %v2817_v9, %v629_v38  ;;  %v766_v16 = vmul.f32 1.442695, %v709_v39 }
 0x271   :  { %v683_v22 = vpop.xlane.xlu0 %682  ;;  %v813_v46 = vsel %vm587_vm2, %v2954_v36, 0.0 }
 0x272   :  { %v742_v40 = vmul.f32 1.442695, %v697_v31  ;;  %v715_v33 = vsub.f32 %v2824_v14, %v683_v22 }
 0x274   :  { %2204 = vpow2.f32 %v742_v40  ;;  %814 = vadd.xlane.f32.xlu0 %v813_v46  ;;  %v2960_v45 = vpop.eup %2200  ;;  %v778_v18 = vmul.f32 1.442695, %v715_v33 }
 0x275   :  { %2206 = vpow2.f32 %v776_v1  ;;  %v807_v9 = vsel %vm587_vm2, %v2960_v45, 0.0  ;;  %v2965_v28 = vpop.eup %2202 }
 0x276   :  { %808 = vadd.xlane.f32.xlu2 %v807_v9  ;;  %2208 = vpow2.f32 %v766_v16  ;;  %v864_v14 = vsel %vm587_vm2, %v2965_v28, 0.0 }
 0x277   :  { %v671_v44 = vpop.xlane.xlu2 %670 }
 0x278   :  { %v711_v6 = vsub.f32 %v2831_v20, %v671_v44 }
 0x279   :  { %v677_v58 = vpop.xlane.xlu0 %676 }
 0x27a   :  { %v2968_v32 = vpop.eup %2204  ;;  %v770_v50 = vmul.f32 1.442695, %v711_v6  ;;  %v713_v20 = vsub.f32 %v2836_v23, %v677_v58 }
 0x27b   :  { %v2971_v43 = vpop.eup %2206  ;;  %v819_v7 = vsel %vm587_vm2, %v2968_v32, 0.0 }
 0x27c   :  { %2210 = vpow2.f32 %v770_v50  ;;  %865 = vadd.xlane.f32.xlu0 %v864_v14  ;;  %820 = vadd.xlane.f32.xlu1 %v819_v7  ;;  %v870_v54 = vsel %vm587_vm2, %v2971_v43, 0.0  ;;  %v2980_v37 = vpop.eup %2208  ;;  %v774_v41 = vmul.f32 1.442695, %v713_v20 }
 0x27d   :  { %2212 = vpow2.f32 %v778_v18  ;;  %4270 = vst [vmem:[#allocation11_spill] sm:$0xff] %v2980_v37  ;;  %v855_v0 = vsel %vm587_vm2, %v2980_v37, 0.0 }
 0x27e   :  { %871 = vadd.xlane.f32.xlu2 %v870_v54  ;;  %2214 = vpow2.f32 %v764_v11 }
 0x27f   :  { %2216 = vpow2.f32 %v774_v41 }
 0x282   :  { %v2982_v52 = vpop.eup %2210 }
 0x283   :  { %v2984_v17 = vpop.eup %2212  ;;  %v861_v21 = vsel %vm587_vm2, %v2982_v52, 0.0 }
 0x284   :  { %4271 = vst [vmem:[#allocation12_spill] sm:$0xff] %v2984_v17  ;;  %856 = vadd.xlane.f32.xlu0 %v855_v0  ;;  %862 = vadd.xlane.f32.xlu1 %v861_v21  ;;  %v873_v23 = vsel %vm587_vm2, %v2984_v17, 0.0  ;;  %v2992_v53 = vpop.eup %2214 }
 0x285   :  { %4272 = vst [vmem:[#allocation13_spill] sm:$0xff] %v2992_v53  ;;  %v2994_v26 = vpop.eup %2216  ;;  %v852_v62 = vsel %vm587_vm2, %v2992_v53, 0.0 }
 0x286   :  { %874 = vadd.xlane.f32.xlu2 %v873_v23  ;;  %4273 = vst [vmem:[#allocation14_spill] sm:$0xff] %v2994_v26  ;;  %v867_v34 = vsel %vm587_vm2, %v2994_v26, 0.0 }
 0x28c   :  { %853 = vadd.xlane.f32.xlu1 %v852_v62 }
 0x28e   :  { %868 = vadd.xlane.f32.xlu2 %v867_v34 }
 0x2a5   :  { %v800_v60 = vpop.xlane.xlu2 %799 }
 0x2a6   :  { %2218 = vrcp.f32 %v800_v60  ;;  %v975_v33 = vand.u32 2147483647, %v800_v60  ;;  %v977_v44 = vand.u32 2147483648, %v800_v60  ;;  %vm971_vm3 = vweird.f32 %v800_v60 }
 0x2a7   :  { %v788_v57 = vpop.xlane.xlu1 %787 }
 0x2a8   :  { %2220 = vrcp.f32 %v788_v57  ;;  %vm3017_vm4 = vcmp.eq.f32.partialorder %v975_v33, 8.507059e+37  ;;  %v915_v58 = vand.u32 2147483647, %v788_v57  ;;  %v978_v0 = vor.u32 1.1754944e-38, %v977_v44 }
 0x2a9   :  { %v917_v21 = vand.u32 2147483648, %v788_v57  ;;  %vm911_vm8 = vweird.f32 %v788_v57 }
 0x2aa   :  { %vm3042_vm9 = vcmp.eq.f32.partialorder %v915_v58, 8.507059e+37 }
 0x2ab   :  { %v918_v58 = vor.u32 1.1754944e-38, %v917_v21 }
 0x2ac   :  { %v2219_v13 = vpop.eup %2218 }
 0x2ad   :  { %v967_v38 = vmul.f32 %v2219_v13, %v800_v60  ;;  %v3000_v31 = vpop.xlane.xlu0 %793  ;;  %v3002_v1 = vpop.xlane.xlu2 %802  ;;  %vm972_vm5 = vweird.f32 %v2219_v13 }
 0x2ae   :  { %v3004_v39 = vpop.eup %2220  ;;  %2222 = vrcp.f32 %v3000_v31  ;;  %v947_v62 = vand.u32 2147483648, %v3000_v31  ;;  %vm3038_vm7 = vmor %vm971_vm3, %vm972_vm5  ;;  %vm941_vm11 = vweird.f32 %v3000_v31  ;;  %vm986_vm15 = vweird.f32 %v3002_v1 }
 0x2af   :  { %v968_v40 = vsub.f32 1.0, %v967_v38  ;;  %v907_v22 = vmul.f32 %v3004_v39, %v788_v57  ;;  %2224 = vrcp.f32 %v3002_v1  ;;  %v3009_v46 = vpop.xlane.xlu1 %781  ;;  %vm912_vm6 = vweird.f32 %v3004_v39 }
 0x2b0   :  { %2226 = vrcp.f32 %v3009_v46  ;;  %vm3055_vm10 = vmor %vm911_vm8, %vm912_vm6 }
 0x2b1   :  { %v908_v16 = vsub.f32 1.0, %v907_v22  ;;  %v969_v9 = vmul.f32 %v2219_v13, %v968_v40 }
 0x2b3   :  { %v909_v18 = vmul.f32 %v3004_v39, %v908_v16  ;;  %v970_v20 = vadd.f32 %v2219_v13, %v969_v9  ;;  %v945_v16 = vand.u32 2147483647, %v3000_v31  ;;  %v990_v9 = vand.u32 2147483647, %v3002_v1 }
 0x2b4   :  { %v3012_v6 = vpop.eup %2222 }
 0x2b5   :  { %v3015_v56 = vpop.eup %2224  ;;  %v937_v14 = vmul.f32 %v3012_v6, %v3000_v31  ;;  %v3023_v7 = vpop.xlane.xlu0 %847  ;;  %v910_v34 = vadd.f32 %v3004_v39, %v909_v18  ;;  %v974_v44 = vsel %vm3038_vm7, %v2219_v13, %v970_v20  ;;  %vm3070_vm13 = vcmp.eq.f32.partialorder %v945_v16, 8.507059e+37 }
 0x2b6   :  { %v982_v11 = vmul.f32 %v3015_v56, %v3002_v1  ;;  %2228 = vrcp.f32 %v3023_v7  ;;  %v3028_v54 = vpop.xlane.xlu2 %835  ;;  %v3030_v41 = vpop.eup %2226  ;;  %vm987_vm12 = vweird.f32 %v3015_v56  ;;  %vm942_vm14 = vweird.f32 %v3012_v6 }
 0x2b7   :  { %v938_v23 = vsub.f32 1.0, %v937_v14  ;;  %v877_v40 = vmul.f32 %v3030_v41, %v3009_v46  ;;  %2230 = vrcp.f32 %v3028_v54  ;;  %v3053_v14 = vpop.xlane.xlu1 %841  ;;  %v914_v13 = vsel %vm3055_vm10, %v3004_v39, %v910_v34  ;;  %vm3087_vm3 = vmor %vm986_vm15, %vm987_vm12 }
 0x2b8   :  { %v983_v38 = vsub.f32 1.0, %v982_v11  ;;  %v948_v11 = vor.u32 1.1754944e-38, %v947_v62  ;;  %v885_v62 = vand.u32 2147483647, %v3009_v46  ;;  %vm3081_vm2 = vcmp.eq.f32.partialorder %v990_v9, 8.507059e+37  ;;  %vm3110_vm5 = vmor %vm941_vm11, %vm942_vm14 }
 0x2b9   :  { %v939_v18 = vmul.f32 %v3012_v6, %v938_v23  ;;  %v878_v26 = vsub.f32 1.0, %v877_v40  ;;  %v992_v23 = vand.u32 2147483648, %v3002_v1  ;;  %v887_v40 = vand.u32 2147483648, %v3009_v46 }
 0x2ba   :  { %v984_v60 = vmul.f32 %v3015_v56, %v983_v38  ;;  %v979_v38 = vsel %vm3017_vm4, %v978_v0, %v974_v44  ;;  %v919_v0 = vsel %vm3042_vm9, %v918_v58, %v914_v13  ;;  %vm881_vm4 = vweird.f32 %v3009_v46 }
 0x2bb   :  { %v940_v34 = vadd.f32 %v3012_v6, %v939_v18  ;;  %v879_v16 = vmul.f32 %v3030_v41, %v878_v26  ;;  %v3098_v1 = vmul.f32 %v2844_v47, %v979_v38  ;;  %v993_v9 = vor.u32 1.1754944e-38, %v992_v23 }
 0x2bc   :  { %v3060_v37 = vpop.eup %2228  ;;  %v985_v20 = vadd.f32 %v3015_v56, %v984_v60  ;;  %2232 = vrcp.f32 %v3053_v14  ;;  %vm3114_vm6 = vcmp.eq.f32.partialorder %v885_v62, 8.507059e+37  ;;  %v888_v58 = vor.u32 1.1754944e-38, %v887_v40 }
 0x2bd   :  { %v1207_v39 = vmul.f32 %v3060_v37, %v3023_v7  ;;  %v3095_v60 = vpop.eup %2230  ;;  %vm1211_vm7 = vweird.f32 %v3023_v7  ;;  %v944_v31 = vsel %vm3110_vm5, %v3012_v6, %v940_v34  ;;  %vm882_vm8 = vweird.f32 %v3030_v41 }
 0x2be   :  { %v989_v33 = vsel %vm3087_vm3, %v3015_v56, %v985_v20  ;;  %v3104_v57 = vpop.xlane.xlu2 %829  ;;  %v1147_v13 = vmul.f32 %v3095_v60, %v3028_v54  ;;  %v3123_v20 = vmul.f32 %v2849_v49, %v919_v0  ;;  %v1215_v23 = vand.u32 2147483647, %v3023_v7  ;;  %vm3156_vm10 = vmor %vm881_vm4, %vm882_vm8 }
 0x2bf   :  { %v1208_v44 = vsub.f32 1.0, %v1207_v39  ;;  %v3093_v18 = vpop.xlane.xlu0 %784  ;;  %v994_v62 = vsel %vm3081_vm2, %v993_v9, %v989_v33  ;;  %v880_v40 = vadd.f32 %v3030_v41, %v879_v16  ;;  %2234 = vrcp.f32 %v3104_v57 }
 0x2c0   :  { %v1148_v39 = vsub.f32 1.0, %v1147_v13  ;;  %vm1212_vm9 = vweird.f32 %v3060_v37  ;;  %v1217_v6 = vand.u32 2147483648, %v3023_v7  ;;  %v1155_v22 = vand.u32 2147483647, %v3028_v54 }
 0x2c1   :  { %v1209_v56 = vmul.f32 %v3060_v37, %v1208_v44  ;;  %v3130_v38 = vpop.xlane.xlu1 %790  ;;  %v1157_v50 = vand.u32 2147483648, %v3028_v54  ;;  %2236 = vrcp.f32 %v3093_v18  ;;  %v949_v33 = vsel %vm3070_vm13, %v948_v11, %v944_v31  ;;  %vm3169_vm12 = vmor %vm1211_vm7, %vm1212_vm9 }
 0x2c2   :  { %v1149_v34 = vmul.f32 %v3095_v60, %v1148_v39  ;;  %v3144_v16 = vpop.eup %2232  ;;  %v3150_v9 = vmul.f32 %v2854_v63, %v994_v62  ;;  %vm3160_vm11 = vcmp.eq.f32.partialorder %v1215_v23, 8.507059e+37  ;;  %v884_v21 = vsel %vm3156_vm10, %v3030_v41, %v880_v40 }
 0x2c3   :  { %v1210_v0 = vadd.f32 %v3060_v37, %v1209_v56  ;;  %vm1152_vm13 = vweird.f32 %v3095_v60  ;;  %v1177_v11 = vmul.f32 %v3144_v16, %v3053_v14  ;;  %v1218_v31 = vor.u32 1.1754944e-38, %v1217_v6 }
 0x2c4   :  { %v1150_v46 = vadd.f32 %v3095_v60, %v1149_v34  ;;  %vm1151_vm14 = vweird.f32 %v3028_v54  ;;  %2238 = vrcp.f32 %v3130_v38  ;;  %v3185_v41 = vmul.f32 %v2857_v4, %v949_v33 }
 0x2c5   :  { %v1214_v13 = vsel %vm3169_vm12, %v3060_v37, %v1210_v0  ;;  %v3182_v7 = vpop.eup %2234  ;;  %vm3187_vm15 = vcmp.eq.f32.partialorder %v1155_v22, 8.507059e+37  ;;  %v1158_v62 = vor.u32 1.1754944e-38, %v1157_v50  ;;  %v1178_v40 = vsub.f32 1.0, %v1177_v11  ;;  %vm3195_vm2 = vmor %vm1151_vm14, %vm1152_vm13 }
 0x2c6   :  { %v889_v37 = vsel %vm3114_vm6, %v888_v58, %v884_v21  ;;  %vm1181_vm3 = vweird.f32 %v3053_v14  ;;  %v1187_v4 = vand.u32 2147483648, %v3053_v14  ;;  %v1117_v0 = vmul.f32 %v3182_v7, %v3104_v57 }
 0x2c7   :  { %v3191_v39 = vpop.xlane.xlu0 %850  ;;  %v3203_v6 = vpop.eup %2236  ;;  %v1219_v22 = vsel %vm3160_vm11, %v1218_v31, %v1214_v13  ;;  %v1154_v47 = vsel %vm3195_vm2, %v3095_v60, %v1150_v46  ;;  %v1185_v58 = vand.u32 2147483647, %v3053_v14  ;;  %v1179_v50 = vmul.f32 %v3144_v16, %v1178_v40 }
 0x2c8   :  { %v1118_v33 = vsub.f32 1.0, %v1117_v0  ;;  %v892_v26 = vmul.f32 %v3203_v6, %v3093_v18  ;;  %2240 = vrcp.f32 %v3191_v39  ;;  %v3219_v63 = vmul.f32 %v2864_v15, %v889_v37 }
 0x2c9   :  { %v3216_v21 = vpop.xlane.xlu1 %832  ;;  %vm1121_vm4 = vweird.f32 %v3104_v57  ;;  %v1125_v56 = vand.u32 2147483647, %v3104_v57  ;;  %v1127_v60 = vand.u32 2147483648, %v3104_v57  ;;  %v3227_v11 = vmul.f32 %v2871_v29, %v1219_v22 }
 0x2ca   :  { %v3224_v46 = vpop.eup %2238  ;;  %v1188_v13 = vor.u32 1.1754944e-38, %v1187_v4  ;;  %v893_v31 = vsub.f32 1.0, %v892_v26  ;;  %v900_v40 = vand.u32 2147483647, %v3093_v18  ;;  %v1159_v54 = vsel %vm3187_vm15, %v1158_v62, %v1154_v47 }
 0x2cb   :  { %vm3232_vm5 = vcmp.eq.f32.partialorder %v1185_v58, 8.507059e+37  ;;  %v1119_v37 = vmul.f32 %v3182_v7, %v1118_v33  ;;  %v922_v0 = vmul.f32 %v3224_v46, %v3130_v38  ;;  %2242 = vrcp.f32 %v3216_v21  ;;  %v3250_v58 = vpop.xlane.xlu2 %796 }
 0x2cc   :  { %v1180_v29 = vadd.f32 %v3144_v16, %v1179_v50  ;;  %vm1182_vm6 = vweird.f32 %v3144_v16  ;;  %vm896_vm7 = vweird.f32 %v3093_v18  ;;  %v902_v23 = vand.u32 2147483648, %v3093_v18 }
 0x2cd   :  { %v930_v62 = vand.u32 2147483647, %v3130_v38  ;;  %vm3245_vm8 = vcmp.eq.f32.partialorder %v1125_v56, 8.507059e+37  ;;  %v1128_v22 = vor.u32 1.1754944e-38, %v1127_v60  ;;  %v923_v47 = vsub.f32 1.0, %v922_v0  ;;  %vm3262_vm10 = vmor %vm1181_vm3, %vm1182_vm6 }
 0x2ce   :  { %vm926_vm9 = vweird.f32 %v3130_v38  ;;  %v3252_v33 = vpop.eup %2240  ;;  %v3256_v26 = vmul.f32 %v2869_v25, %v1159_v54  ;;  %v894_v34 = vmul.f32 %v3203_v6, %v893_v31  ;;  %v932_v56 = vand.u32 2147483648, %v3130_v38 }
 0x2cf   :  { %v1120_v0 = vadd.f32 %v3182_v7, %v1119_v37  ;;  %vm1122_vm11 = vweird.f32 %v3182_v7  ;;  %v924_v49 = vmul.f32 %v3224_v46, %v923_v47  ;;  %v1222_v25 = vmul.f32 %v3252_v33, %v3191_v39 }
 0x2d0   :  { %v1184_v31 = vsel %vm3262_vm10, %v3144_v16, %v1180_v29  ;;  %vm897_vm12 = vweird.f32 %v3203_v6  ;;  %vm3275_vm13 = vcmp.eq.f32.partialorder %v900_v40, 8.507059e+37  ;;  %v903_v54 = vor.u32 1.1754944e-38, %v902_v23  ;;  %v3288_v16 = vpop.xlane.xlu0 %844  ;;  %vm3295_vm2 = vmor %vm1121_vm4, %vm1122_vm11 }
 0x2d1   :  { %vm3279_vm14 = vcmp.eq.f32.partialorder %v930_v62, 8.507059e+37  ;;  %v3283_v50 = vpop.eup %2242  ;;  %v925_v47 = vadd.f32 %v3224_v46, %v924_v49  ;;  %vm927_vm15 = vweird.f32 %v3224_v46  ;;  %v1223_v44 = vsub.f32 1.0, %v1222_v25  ;;  %v3308_v53 = vpop.xlane.xlu1 %823  ;;  %vm3326_vm6 = vmor %vm896_vm7, %vm897_vm12 }
 0x2d2   :  { %2244 = vrcp.f32 %v3250_v58  ;;  %v895_v23 = vadd.f32 %v3203_v6, %v894_v34  ;;  %v933_v49 = vor.u32 1.1754944e-38, %v932_v56  ;;  %v1132_v62 = vmul.f32 %v3283_v50, %v3216_v21  ;;  %vm3316_vm3 = vmor %vm926_vm9, %vm927_vm15 }
 0x2d3   :  { %v1124_v60 = vsel %vm3295_vm2, %v3182_v7, %v1120_v0  ;;  %v1224_v25 = vmul.f32 %v3252_v33, %v1223_v44  ;;  %v1230_v40 = vand.u32 2147483647, %v3191_v39  ;;  %v1232_v57 = vand.u32 2147483648, %v3191_v39 }
 0x2d4   :  { %v1189_v17 = vsel %vm3232_vm5, %v1188_v13, %v1184_v31  ;;  %vm1226_vm4 = vweird.f32 %v3191_v39  ;;  %v1133_v44 = vsub.f32 1.0, %v1132_v62  ;;  %2246 = vrcp.f32 %v3288_v16 }
 0x2d5   :  { %v929_v38 = vsel %vm3316_vm3, %v3224_v46, %v925_v47  ;;  %v1225_v13 = vadd.f32 %v3252_v33, %v1224_v25  ;;  %vm1227_vm5 = vweird.f32 %v3252_v33  ;;  %v1140_v15 = vand.u32 2147483647, %v3216_v21 }
 0x2d6   :  { %v1129_v56 = vsel %vm3245_vm8, %v1128_v22, %v1124_v60  ;;  %v899_v18 = vsel %vm3326_vm6, %v3203_v6, %v895_v23  ;;  %v1134_v0 = vmul.f32 %v3283_v50, %v1133_v44  ;;  %2248 = vrcp.f32 %v3308_v53  ;;  %v3353_v22 = vpop.xlane.xlu2 %838  ;;  %vm3359_vm8 = vmor %vm1226_vm4, %vm1227_vm5 }
 0x2d7   :  { %v3346_v46 = vmul.f32 %v2878_v35, %v1189_v17  ;;  %vm3348_vm7 = vcmp.eq.f32.partialorder %v1230_v40, 8.507059e+37  ;;  %v1233_v29 = vor.u32 1.1754944e-38, %v1232_v57  ;;  %v1142_v4 = vand.u32 2147483648, %v3216_v21 }
 0x2d8   :  { %v3343_v31 = vpop.eup %2244  ;;  %v934_v6 = vsel %vm3279_vm14, %v933_v49, %v929_v38  ;;  %vm1136_vm9 = vweird.f32 %v3216_v21  ;;  %v962_v17 = vand.u32 2147483648, %v3250_v58  ;;  %v3368_v40 = vmul.f32 %v2884_v48, %v1129_v56  ;;  %v3390_v57 = vpop.xlane.xlu0 %811 }
 0x2d9   :  { %v952_v35 = vmul.f32 %v3343_v31, %v3250_v58  ;;  %v904_v37 = vsel %vm3275_vm13, %v903_v54, %v899_v18  ;;  %v1229_v39 = vsel %vm3359_vm8, %v3252_v33, %v1225_v13  ;;  %vm3375_vm10 = vcmp.eq.f32.partialorder %v1140_v15, 8.507059e+37  ;;  %v3410_v18 = vpop.xlane.xlu1 %826 }
 0x2da   :  { %v3379_v62 = vpop.eup %2246  ;;  %v1135_v60 = vadd.f32 %v3283_v50, %v1134_v0  ;;  %vm1137_vm11 = vweird.f32 %v3283_v50  ;;  %2250 = vrcp.f32 %v3353_v22  ;;  %v3385_v48 = vmul.f32 %v2895_v55, %v934_v6 }
 0x2db   :  { %v953_v25 = vsub.f32 1.0, %v952_v35  ;;  %v1143_v14 = vor.u32 1.1754944e-38, %v1142_v4  ;;  %v960_v54 = vand.u32 2147483647, %v3250_v58  ;;  %v1192_v33 = vmul.f32 %v3379_v62, %v3288_v16  ;;  %vm3402_vm13 = vmor %vm1136_vm9, %vm1137_vm11 }
 0x2dc   :  { %v3392_v34 = vpop.eup %2248  ;;  %v3395_v44 = vmul.f32 %v2889_v51, %v904_v37  ;;  %v1234_v7 = vsel %vm3348_vm7, %v1233_v29, %v1229_v39  ;;  %vm956_vm12 = vweird.f32 %v3250_v58  ;;  %v963_v55 = vor.u32 1.1754944e-38, %v962_v17 }
 0x2dd   :  { %v954_v13 = vmul.f32 %v3343_v31, %v953_v25  ;;  %v1193_v15 = vsub.f32 1.0, %v1192_v33  ;;  %v1200_v56 = vand.u32 2147483647, %v3288_v16  ;;  %v1087_v51 = vmul.f32 %v3392_v34, %v3308_v53 }
 0x2de   :  { %v1139_v0 = vsel %vm3402_vm13, %v3283_v50, %v1135_v60  ;;  %vm1196_vm14 = vweird.f32 %v3288_v16  ;;  %v1202_v21 = vand.u32 2147483648, %v3288_v16  ;;  %v1095_v47 = vand.u32 2147483647, %v3308_v53  ;;  %v3440_v25 = vpop.xlane.xlu2 %817 }
 0x2df   :  { %2252 = vrcp.f32 %v3390_v57  ;;  %v1362_v29 = vrot.slane %v3385_v48, 4  ;;  %v3421_v4 = vmul.f32 %v2899_v61, %v1234_v7  ;;  %vm3423_vm15 = vcmp.eq.f32.partialorder %v960_v54, 8.507059e+37 }
 0x2e0   :  { %v1088_v23 = vsub.f32 1.0, %v1087_v51  ;;  %vm1091_vm2 = vweird.f32 %v3308_v53  ;;  %v3428_v50 = vpop.eup %2250  ;;  %vm957_vm3 = vweird.f32 %v3343_v31  ;;  %v1194_v35 = vmul.f32 %v3379_v62, %v1193_v15 }
 0x2e1   :  { %v1097_v17 = vand.u32 2147483648, %v3308_v53  ;;  %2254 = vrcp.f32 %v3410_v18  ;;  %v1144_v61 = vsel %vm3375_vm10, %v1143_v14, %v1139_v0  ;;  %v955_v37 = vadd.f32 %v3343_v31, %v954_v13  ;;  %vm3462_vm8 = vmor %vm956_vm12, %vm957_vm3 }
 0x2e2   :  { %v1089_v39 = vmul.f32 %v3392_v34, %v1088_v23  ;;  %v1162_v60 = vmul.f32 %v3428_v50, %v3353_v22  ;;  %v1203_v54 = vor.u32 1.1754944e-38, %v1202_v21  ;;  %vm1092_vm4 = vweird.f32 %v3392_v34 }
 0x2e3   :  { %vm3443_vm6 = vcmp.eq.f32.partialorder %v1095_v47, 8.507059e+37  ;;  %v1170_v7 = vand.u32 2147483647, %v3353_v22  ;;  %v1486_v49 = vrot.slane %v3421_v4, 4  ;;  %vm1197_vm5 = vweird.f32 %v3379_v62  ;;  %vm3475_vm9 = vmor %vm1091_vm2, %vm1092_vm4 }
 0x2e4   :  { %vm3450_vm7 = vcmp.eq.f32.partialorder %v1200_v56, 8.507059e+37  ;;  %v1090_v38 = vadd.f32 %v3392_v34, %v1089_v39  ;;  %v1163_v13 = vsub.f32 1.0, %v1162_v60  ;;  %v3456_v51 = vmul.f32 %v2903_v2, %v1144_v61  ;;  %vm3497_vm13 = vmor %vm1196_vm14, %vm1197_vm5  ;;  %v3505_v60 = vpop.xlane.xlu0 %805 }
 0x2e5   :  { %v2253_v15 = vpop.eup %2252  ;;  %v1195_v56 = vadd.f32 %v3379_v62, %v1194_v35  ;;  %v1098_v21 = vor.u32 1.1754944e-38, %v1097_v17  ;;  %2256 = vrcp.f32 %v3440_v25  ;;  %v959_v47 = vsel %vm3462_vm8, %v3343_v31, %v955_v37 }
 0x2e6   :  { %v1164_v58 = vmul.f32 %v3428_v50, %v1163_v13  ;;  %vm1166_vm10 = vweird.f32 %v3353_v22  ;;  %v1027_v23 = vmul.f32 %v2253_v15, %v3390_v57  ;;  %v1094_v31 = vsel %vm3475_vm9, %v3392_v34, %v1090_v38 }
 0x2e7   :  { %v3482_v35 = vpop.eup %2254  ;;  %vm3487_vm11 = vcmp.eq.f32.partialorder %v1170_v7, 8.507059e+37  ;;  %v1172_v53 = vand.u32 2147483648, %v3353_v22  ;;  %vm1031_vm12 = vweird.f32 %v3390_v57  ;;  %vm1167_vm2 = vweird.f32 %v3428_v50 }
 0x2e8   :  { %v1165_v37 = vadd.f32 %v3428_v50, %v1164_v58  ;;  %v1028_v34 = vsub.f32 1.0, %v1027_v23  ;;  %v1102_v39 = vmul.f32 %v3482_v35, %v3410_v18  ;;  %v964_v7 = vsel %vm3423_vm15, %v963_v55, %v959_v47  ;;  %vm3520_vm3 = vmor %vm1166_vm10, %vm1167_vm2 }
 0x2e9   :  { %v1199_v16 = vsel %vm3497_vm13, %v3379_v62, %v1195_v56  ;;  %v1035_v38 = vand.u32 2147483647, %v3390_v57  ;;  %v1037_v13 = vand.u32 2147483648, %v3390_v57  ;;  %v1099_v0 = vsel %vm3443_vm6, %v1098_v21, %v1094_v31  ;;  %v3533_v31 = vpop.xlane.xlu1 %859 }
 0x2ea   :  { %v1029_v2 = vmul.f32 %v2253_v15, %v1028_v34  ;;  %vm1032_vm14 = vweird.f32 %v2253_v15  ;;  %v1103_v58 = vsub.f32 1.0, %v1102_v39  ;;  %v1173_v6 = vor.u32 1.1754944e-38, %v1172_v53 }
 0x2eb   :  { %v3516_v23 = vpop.eup %2256  ;;  %v1110_v62 = vand.u32 2147483647, %v3410_v18  ;;  %v1112_v56 = vand.u32 2147483648, %v3410_v18  ;;  %2258 = vrcp.f32 %v3505_v60  ;;  %v1169_v33 = vsel %vm3520_vm3, %v3428_v50, %v1165_v37  ;;  %vm3544_vm15 = vmor %vm1031_vm12, %vm1032_vm14 }
 0x2ec   :  { %v1030_v21 = vadd.f32 %v2253_v15, %v1029_v2  ;;  %v1104_v47 = vmul.f32 %v3482_v35, %v1103_v58  ;;  %v1057_v22 = vmul.f32 %v3516_v23, %v3440_v25  ;;  %v965_v53 = vmul.f32 %v2908_v24, %v964_v7 }
 0x2ed   :  { %v1204_v61 = vsel %vm3450_vm7, %v1203_v54, %v1199_v16  ;;  %v3539_v34 = vmul.f32 %v2918_v42, %v1099_v0  ;;  %vm1036_vm4 = vcmp.eq.f32.partialorder %v1035_v38, 8.507059e+37  ;;  %v1038_v39 = vor.u32 1.1754944e-38, %v1037_v13 }
 0x2ee   :  { %v1034_v37 = vsel %vm3544_vm15, %v2253_v15, %v1030_v21  ;;  %vm1106_vm6 = vweird.f32 %v3410_v18  ;;  %v1067_v24 = vand.u32 2147483648, %v3440_v25  ;;  %v1174_v42 = vsel %vm3487_vm11, %v1173_v6, %v1169_v33 }
 0x2ef   :  { %v1105_v54 = vadd.f32 %v3482_v35, %v1104_v47  ;;  %vm1107_vm5 = vweird.f32 %v3482_v35  ;;  %2260 = vrcp.f32 %v3533_v31  ;;  %v3558_v57 = vmul.f32 %v2914_v10, %v1204_v61 }
 0x2f0   :  { %vm3560_vm7 = vcmp.eq.f32.partialorder %v1110_v62, 8.507059e+37  ;;  %v1113_v15 = vor.u32 1.1754944e-38, %v1112_v56  ;;  %v1058_v7 = vsub.f32 1.0, %v1057_v22  ;;  %v1424_v17 = vrot.slane %v3539_v34, 4  ;;  %vm3577_vm8 = vmor %vm1106_vm6, %vm1107_vm5 }
 0x2f1   :  { %v3564_v16 = vpop.eup %2258  ;;  %v1039_v38 = vsel %vm1036_vm4, %v1038_v39, %v1034_v37  ;;  %v1065_v13 = vand.u32 2147483647, %v3440_v25  ;;  %v4346_v0 = vrot.slane %v3123_v20, 4  ;;  %v3573_v10 = vmul.f32 %v2923_v27, %v1174_v42  ;;  %v3611_v37 = vpop.xlane.xlu0 %814 }
 0x2f2   :  { %vm1062_vm9 = vweird.f32 %v3516_v23  ;;  %v3582_v55 = vor.u32 1.1754944e-38, %v1067_v24  ;;  %v997_v6 = vmul.f32 %v3564_v16, %v3505_v60  ;;  %v1109_v20 = vsel %vm3577_vm8, %v3482_v35, %v1105_v54 }
 0x2f3   :  { %v1357_v2 = vsel %vm363_vm1, %v4346_v0, %v3219_v63  ;;  %vm1061_vm10 = vweird.f32 %v3440_v25  ;;  %v1005_v27 = vand.u32 2147483647, %v3505_v60  ;;  %v1007_v63 = vand.u32 2147483648, %v3505_v60  ;;  %v3625_v0 = vpop.xlane.xlu2 %808 }
 0x2f4   :  { %v1361_v18 = vperm.slane %v1357_v2, %v2607_v8  ;;  %v3594_v62 = vmul.f32 %v2929_v30, %v1039_v38  ;;  %v1059_v56 = vmul.f32 %v3516_v23, %v1058_v7  ;;  %v998_v33 = vsub.f32 1.0, %v997_v6  ;;  %vm3642_vm14 = vmor %vm1061_vm10, %vm1062_vm9 }
 0x2f5   :  { %v1363_v21 = vsel %vm363_vm1, %v1362_v29, %v3395_v44  ;;  %v2261_v35 = vpop.eup %2260  ;;  %vm1001_vm11 = vweird.f32 %v3505_v60  ;;  %vm1271_vm12 = vweird.f32 %v3533_v31  ;;  %v4349_v22 = vrot.slane %v3098_v1, 4 }
 0x2f6   :  { %v1367_v47 = vperm.slane %v1363_v21, %v2607_v8  ;;  %v4350_v61 = vrot.slane %v3150_v9, 4  ;;  %v1114_v48 = vsel %vm3560_vm7, %v1113_v15, %v1109_v20  ;;  %v999_v44 = vmul.f32 %v3564_v16, %v998_v33 }
 0x2f7   :  { %v1369_v30 = vsel %vm363_vm1, %v4349_v22, %v3185_v41  ;;  %v1267_v29 = vmul.f32 %v2261_v35, %v3533_v31  ;;  %v1275_v39 = vand.u32 2147483647, %v3533_v31  ;;  %v1382_v41 = vrot.slane %v1361_v18, 4 }
 0x2f8   :  { %v1375_v50 = vsel %vm363_vm1, %v4350_v61, %v965_v53  ;;  %v1373_v24 = vperm.slane %v1369_v30, %v2607_v8  ;;  %v1380_v42 = vrot.slane %v1367_v47, 4  ;;  %v1060_v9 = vadd.f32 %v3516_v23, %v1059_v56 }
 0x2f9   :  { %v1379_v1 = vperm.slane %v1375_v50, %v2607_v8  ;;  %v1268_v53 = vsub.f32 1.0, %v1267_v29  ;;  %v1277_v54 = vand.u32 2147483648, %v3533_v31  ;;  %2262 = vrcp.f32 %v3611_v37 }
 0x2fa   :  { %v1383_v14 = vsel %vm363_vm1, %v1367_v47, %v1382_v41  ;;  %v1394_v15 = vrot.slane %v1373_v24, 4  ;;  %v1381_v7 = vsel %vm363_vm1, %v1380_v42, %v1361_v18  ;;  %vm1272_vm13 = vweird.f32 %v2261_v35 }
 0x2fb   :  { %v1392_v38 = vrot.slane %v1379_v1, 4  ;;  %v1269_v2 = vmul.f32 %v2261_v35, %v1268_v53  ;;  %v1391_v58 = vperm.slane %v1383_v14, %v2614_v19  ;;  %v3629_v6 = vperm.slane %v1381_v7, %v2614_v19  ;;  %vm3652_vm3 = vmor %vm1271_vm12, %vm1272_vm13  ;;  %v3691_v7 = vpop.xlane.xlu1 %820 }
 0x2fc   :  { %v1000_v20 = vadd.f32 %v3564_v16, %v999_v44  ;;  %vm1002_vm2 = vweird.f32 %v3564_v16  ;;  %v1395_v56 = vsel %vm363_vm1, %v1379_v1, %v1394_v15  ;;  %v3636_v18 = vmul.f32 %v2932_v59, %v1114_v48 }
 0x2fd   :  { %v1393_v33 = vsel %vm363_vm1, %v1392_v38, %v1373_v24  ;;  %v1270_v47 = vadd.f32 %v2261_v35, %v1269_v2  ;;  %v1403_v22 = vperm.slane %v1395_v56, %v2614_v19  ;;  %v1410_v30 = vrot.slane %v1391_v58, 4  ;;  %vm3664_vm15 = vmor %vm1001_vm11, %vm1002_vm2  ;;  %v3702_v38 = vpop.xlane.xlu2 %871 }
 0x2fe   :  { %v1064_v61 = vsel %vm3642_vm14, %v3516_v23, %v1060_v9  ;;  %v1278_v50 = vor.u32 1.1754944e-38, %v1277_v54  ;;  %v3657_v48 = vperm.slane %v1393_v33, %v2614_v19  ;;  %v1406_v44 = vrot.slane %v3629_v6, 4 }
 0x2ff   :  { %v3660_v29 = vpop.eup %2262  ;;  %v1274_v23 = vsel %vm3652_vm3, %v2261_v35, %v1270_v47  ;;  %v1411_v31 = vsel %vm363_vm1, %v1403_v22, %v1410_v30  ;;  %v1408_v1 = vrot.slane %v1403_v22, 4  ;;  %2264 = vrcp.f32 %v3625_v0  ;;  %v3680_v35 = vpop.xlane.xlu0 %865 }
 0x300   :  { %v1004_v41 = vsel %vm3664_vm15, %v3564_v16, %v1000_v20  ;;  %vm1276_vm4 = vcmp.eq.f32.partialorder %v1275_v39, 8.507059e+37  ;;  %1616 = vrot.lane.b32.xlu2 %v1411_v31, %s2391_s25  ;;  %v1407_v42 = vsel %vm363_vm1, %v3657_v48, %v1406_v44  ;;  %v1042_v9 = vmul.f32 %v3660_v29, %v3611_v37 }
 0x301   :  { %vm1066_vm6 = vcmp.eq.f32.partialorder %v1065_v13, 8.507059e+37  ;;  %v1008_v53 = vor.u32 1.1754944e-38, %v1007_v63  ;;  %v1279_v54 = vsel %vm1276_vm4, %v1278_v50, %v1274_v23  ;;  %v1409_v14 = vsel %vm363_vm1, %v1408_v1, %v1391_v58  ;;  %1584 = vrot.lane.b32.xlu0 %v1407_v42, %s2384_s22 }
 0x302   :  { %v1474_v16 = vrot.slane %v3573_v10, 4  ;;  %v1069_v39 = vsel %vm1066_vm6, %v3582_v55, %v1064_v61  ;;  %vm1006_vm5 = vcmp.eq.f32.partialorder %v1005_v27, 8.507059e+37  ;;  %1600 = vrot.lane.b32.xlu1 %v1409_v14, %s2392_s26  ;;  %v1043_v15 = vsub.f32 1.0, %v1042_v9 }
 0x303   :  { %v1009_v25 = vsel %vm1006_vm5, %v1008_v53, %v1004_v41  ;;  %v1050_v13 = vand.u32 2147483647, %v3611_v37  ;;  %v1052_v63 = vand.u32 2147483648, %v3611_v37  ;;  %2266 = vrcp.f32 %v3680_v35 }
 0x304   :  { %v1412_v10 = vrot.slane %v3594_v62, 4  ;;  %v1430_v55 = vrot.slane %v3636_v18, 4  ;;  %v3699_v60 = vmul.f32 %v2946_v5, %v1279_v54  ;;  %v1044_v27 = vmul.f32 %v3660_v29, %v1043_v15 }
 0x305   :  { %v3704_v2 = vpop.eup %2264  ;;  %v3707_v58 = vmul.f32 %v2936_v3, %v1069_v39  ;;  %vm1046_vm7 = vweird.f32 %v3611_v37  ;;  %v1022_v20 = vand.u32 2147483648, %v3625_v0  ;;  %2268 = vrcp.f32 %v3691_v7 }
 0x306   :  { %v3713_v56 = vmul.f32 %v2943_v12, %v1009_v25  ;;  %v1045_v5 = vadd.f32 %v3660_v29, %v1044_v27  ;;  %vm1047_vm8 = vweird.f32 %v3660_v29  ;;  %v1012_v33 = vmul.f32 %v3704_v2, %v3625_v0 }
 0x307   :  { %vm3719_vm9 = vcmp.eq.f32.partialorder %v1050_v13, 8.507059e+37  ;;  %v1053_v3 = vor.u32 1.1754944e-38, %v1052_v63  ;;  %v1307_v47 = vand.u32 2147483648, %v3680_v35  ;;  %2270 = vrcp.f32 %v3702_v38  ;;  %vm3732_vm11 = vmor %vm1046_vm7, %vm1047_vm8 }
 0x308   :  { %v1524_v22 = vrot.slane %v3699_v60, 4  ;;  %v1013_v12 = vsub.f32 1.0, %v1012_v33  ;;  %vm1016_vm10 = vweird.f32 %v3625_v0  ;;  %v1020_v30 = vand.u32 2147483647, %v3625_v0 }
 0x309   :  { %v3728_v61 = vpop.eup %2266  ;;  %v1023_v50 = vor.u32 1.1754944e-38, %v1022_v20  ;;  %vm1301_vm12 = vweird.f32 %v3680_v35  ;;  %v1305_v44 = vand.u32 2147483647, %v3680_v35  ;;  %v1080_v24 = vand.u32 2147483647, %v3691_v7 }
 0x30a   :  { %v1475_v23 = vsel %vm363_vm1, %v1474_v16, %v3456_v51  ;;  %v1049_v31 = vsel %vm3732_vm11, %v3660_v29, %v1045_v5  ;;  %v1014_v37 = vmul.f32 %v3704_v2, %v1013_v12  ;;  %vm1017_vm13 = vweird.f32 %v3704_v2  ;;  %v3787_v12 = vpop.xlane.xlu1 %862 }
 0x30b   :  { %v1297_v1 = vmul.f32 %v3728_v61, %v3680_v35  ;;  %v3748_v41 = vpop.eup %2268  ;;  %v1308_v42 = vor.u32 1.1754944e-38, %v1307_v47  ;;  %vm1076_vm2 = vweird.f32 %v3691_v7  ;;  %v1082_v9 = vand.u32 2147483648, %v3691_v7  ;;  %v3785_v47 = vpop.xlane.xlu0 %856  ;;  %vm3793_vm15 = vmor %vm1016_vm10, %vm1017_vm13 }
 0x30c   :  { %v1335_v51 = vand.u32 2147483647, %v3702_v38  ;;  %v3754_v53 = vperm.slane %v1475_v23, %v2607_v8  ;;  %v1015_v29 = vadd.f32 %v3704_v2, %v1014_v37  ;;  %vm3757_vm14 = vcmp.eq.f32.partialorder %v1020_v30, 8.507059e+37 }
 0x30d   :  { %v1298_v14 = vsub.f32 1.0, %v1297_v1  ;;  %v1072_v16 = vmul.f32 %v3748_v41, %v3691_v7  ;;  %v4363_v39 = vrot.slane %v3256_v26, 4  ;;  %v2271_v25 = vpop.eup %2270  ;;  %v1054_v13 = vsel %vm3719_vm9, %v1053_v3, %v1049_v31 }
 0x30e   :  { %vm3769_vm3 = vcmp.eq.f32.partialorder %v1305_v44, 8.507059e+37  ;;  %v1337_v27 = vand.u32 2147483648, %v3702_v38  ;;  %v1487_v20 = vsel %vm363_vm1, %v1486_v49, %v3558_v57  ;;  %v1492_v5 = vrot.slane %v3754_v53, 4  ;;  %v3814_v44 = vpop.xlane.xlu2 %874 }
 0x30f   :  { %v1469_v15 = vsel %vm363_vm1, %v4363_v39, %v3368_v40  ;;  %v1299_v26 = vmul.f32 %v3728_v61, %v1298_v14  ;;  %v1073_v40 = vsub.f32 1.0, %v1072_v16  ;;  %v1327_v33 = vmul.f32 %v2271_v25, %v3702_v38 }
 0x310   :  { %v4366_v21 = vrot.slane %v3227_v11, 4  ;;  %vm1302_vm4 = vweird.f32 %v3728_v61  ;;  %vm1077_vm6 = vweird.f32 %v3748_v41  ;;  %vm3799_vm5 = vcmp.eq.f32.partialorder %v1080_v24, 8.507059e+37 }
 0x311   :  { %v3807_v49 = vperm.slane %v1487_v20, %v2607_v8  ;;  %v1019_v57 = vsel %vm3793_vm15, %v3704_v2, %v1015_v29  ;;  %v1300_v0 = vadd.f32 %v3728_v61, %v1299_v26  ;;  %v1074_v30 = vmul.f32 %v3748_v41, %v1073_v40  ;;  %vm3825_vm7 = vmor %vm1301_vm12, %vm1302_vm4 }
 0x312   :  { %v1481_v3 = vsel %vm363_vm1, %v4366_v21, %v3346_v46  ;;  %v3804_v46 = vperm.slane %v1469_v15, %v2607_v8  ;;  %v1328_v59 = vsub.f32 1.0, %v1327_v33  ;;  %2272 = vrcp.f32 %v3785_v47  ;;  %vm3846_vm10 = vmor %vm1076_vm2, %vm1077_vm6  ;;  %v3873_v33 = vpop.xlane.xlu1 %853 }
 0x313   :  { %v3817_v24 = vperm.slane %v1481_v3, %v2607_v8  ;;  %v1504_v31 = vrot.slane %v3807_v49, 4  ;;  %v1075_v37 = vadd.f32 %v3748_v41, %v1074_v30  ;;  %vm1332_vm8 = vweird.f32 %v2271_v25 }
 0x314   :  { %v1493_v23 = vsel %vm363_vm1, %v1492_v5, %v3804_v46  ;;  %v1329_v1 = vmul.f32 %v2271_v25, %v1328_v59  ;;  %v3834_v14 = vmul.f32 %v2954_v36, %v1054_v13  ;;  %v1304_v16 = vsel %vm3825_vm7, %v3728_v61, %v1300_v0 }
 0x315   :  { %v3831_v29 = vperm.slane %v1493_v23, %v2614_v19  ;;  %vm1331_vm9 = vweird.f32 %v3702_v38  ;;  %v1505_v35 = vsel %vm363_vm1, %v1504_v31, %v3817_v24  ;;  %v1083_v15 = vor.u32 1.1754944e-38, %v1082_v9 }
 0x316   :  { %v1330_v36 = vadd.f32 %v2271_v25, %v1329_v1  ;;  %vm1336_vm11 = vcmp.eq.f32.partialorder %v1335_v51, 8.507059e+37  ;;  %v1338_v13 = vor.u32 1.1754944e-38, %v1337_v27  ;;  %v1024_v61 = vsel %vm3757_vm14, %v1023_v50, %v1019_v57  ;;  %vm1333_vm12 = vmor %vm1331_vm9, %vm1332_vm8  ;;  %v3889_v0 = vpop.xlane.xlu2 %868 }
 0x317   :  { %v1079_v38 = vsel %vm3846_vm10, %v3748_v41, %v1075_v37  ;;  %v3856_v20 = vperm.slane %v1505_v35, %v2614_v19  ;;  %v1518_v7 = vrot.slane %v3831_v29, 4  ;;  %v1309_v5 = vsel %vm3769_vm3, %v1308_v42, %v1304_v16 }
 0x318   :  { %v1334_v9 = vsel %vm1333_vm12, %v2271_v25, %v1330_v36  ;;  %v1260_v51 = vand.u32 2147483647, %v3785_v47  ;;  %2274 = vrcp.f32 %v3787_v12  ;;  %v2273_v54 = vpop.eup %2272  ;;  %v1418_v50 = vrot.slane %v3834_v14, 4 }
 0x319   :  { %v1339_v27 = vsel %vm1336_vm11, %v1338_v13, %v1334_v9  ;;  %v1519_v41 = vsel %vm363_vm1, %v3856_v20, %v1518_v7  ;;  %v1262_v26 = vand.u32 2147483648, %v3785_v47  ;;  %v1025_v40 = vmul.f32 %v2960_v45, %v1024_v61 }
 0x31a   :  { %v1084_v63 = vsel %vm3799_vm5, %v1083_v15, %v1079_v38  ;;  %v1506_v42 = vrot.slane %v3817_v24, 4  ;;  %1588 = vrot.lane.b32.xlu2 %v1519_v41, %s2384_s22  ;;  %v1252_v25 = vmul.f32 %v2273_v54, %v3785_v47  ;;  %v3876_v21 = vmul.f32 %v2965_v28, %v1309_v5 }
 0x31b   :  { %v3879_v3 = vmul.f32 %v2971_v43, %v1339_v27  ;;  %vm1256_vm13 = vweird.f32 %v3785_v47  ;;  %2276 = vrcp.f32 %v3814_v44  ;;  %vm3883_vm2 = vcmp.eq.f32.partialorder %v1260_v51, 8.507059e+37 }
 0x31c   :  { %v1253_v45 = vsub.f32 1.0, %v1252_v25  ;;  %v1290_v11 = vand.u32 2147483647, %v3787_v12  ;;  %v1292_v57 = vand.u32 2147483648, %v3787_v12  ;;  %v1085_v28 = vmul.f32 %v2968_v32, %v1084_v63  ;;  %v4390_v63 = vld [vmem:[#allocation14_spill] sm:$0xff] }
 0x31d   :  { %v1263_v30 = vor.u32 1.1754944e-38, %v1262_v26  ;;  %v1352_v43 = vand.u32 2147483648, %v3814_v44  ;;  %2278 = vrcp.f32 %v3873_v33  ;;  %vm1257_vm14 = vweird.f32 %v2273_v54 }
 0x31e   :  { %v2275_v59 = vpop.eup %2274  ;;  %v1254_v23 = vmul.f32 %v2273_v54, %v1253_v45  ;;  %vm1286_vm3 = vweird.f32 %v3787_v12  ;;  %v1350_v31 = vand.u32 2147483647, %v3814_v44  ;;  %v1536_v2 = vrot.slane %v3879_v3, 4  ;;  %vm3908_vm6 = vmor %vm1256_vm13, %vm1257_vm14 }
 0x31f   :  { %v1282_v37 = vmul.f32 %v2275_v59, %v3787_v12  ;;  %v1247_v1 = vand.u32 2147483648, %v3873_v33  ;;  %2280 = vrcp.f32 %v3889_v0  ;;  %vm3900_vm15 = vcmp.eq.f32.partialorder %v1290_v11, 8.507059e+37 }
 0x320   :  { %v1255_v32 = vadd.f32 %v2273_v54, %v1254_v23  ;;  %v1293_v16 = vor.u32 1.1754944e-38, %v1292_v57  ;;  %vm1346_vm4 = vweird.f32 %v3814_v44  ;;  %v1245_v35 = vand.u32 2147483647, %v3873_v33 }
 0x321   :  { %v2277_v39 = vpop.eup %2276  ;;  %v1283_v36 = vsub.f32 1.0, %v1282_v37  ;;  %vm1287_vm5 = vweird.f32 %v2275_v59  ;;  %v1353_v13 = vor.u32 1.1754944e-38, %v1352_v43  ;;  %v1413_v61 = vsel %vm363_vm1, %v1412_v10, %v3713_v56 }
 0x322   :  { %v1259_v38 = vsel %vm3908_vm6, %v2273_v54, %v1255_v32  ;;  %v1342_v7 = vmul.f32 %v2277_v39, %v3814_v44  ;;  %vm3919_vm7 = vcmp.eq.f32.partialorder %v1350_v31, 8.507059e+37  ;;  %vm1241_vm8 = vweird.f32 %v3873_v33  ;;  %vm1288_vm12 = vmor %vm1286_vm3, %vm1287_vm5 }
 0x323   :  { %v1320_v47 = vand.u32 2147483647, %v3889_v0  ;;  %v1419_v9 = vsel %vm363_vm1, %v1418_v50, %v1025_v40  ;;  %v2279_v51 = vpop.eup %2278  ;;  %v1284_v27 = vmul.f32 %v2275_v59, %v1283_v36  ;;  %v1248_v62 = vor.u32 1.1754944e-38, %v1247_v1 }
 0x324   :  { %v1322_v10 = vand.u32 2147483648, %v3889_v0  ;;  %v1417_v56 = vperm.slane %v1413_v61, %v2607_v8  ;;  %v1264_v54 = vsel %vm3883_vm2, %v1263_v30, %v1259_v38  ;;  %v1343_v41 = vsub.f32 1.0, %v1342_v7 }
 0x325   :  { %vm1347_vm9 = vweird.f32 %v2277_v39  ;;  %v1237_v26 = vmul.f32 %v2279_v51, %v3873_v33  ;;  %vm3931_vm10 = vcmp.eq.f32.partialorder %v1245_v35, 8.507059e+37  ;;  %vm1316_vm11 = vweird.f32 %v3889_v0  ;;  %v2281_v50 = vpop.eup %2280 }
 0x326   :  { %v1285_v40 = vadd.f32 %v2275_v59, %v1284_v27  ;;  %v1423_v25 = vperm.slane %v1419_v9, %v2607_v8  ;;  %v1425_v45 = vsel %vm363_vm1, %v1424_v17, %v3707_v58  ;;  %v1431_v4 = vsel %vm363_vm1, %v1430_v55, %v1085_v28  ;;  %vm1348_vm14 = vmor %vm1346_vm4, %vm1347_vm9  ;;  %v4388_v27 = vld [vmem:[#allocation13_spill] sm:$0xff] }
 0x327   :  { %v1344_v11 = vmul.f32 %v2277_v39, %v1343_v41  ;;  %v1238_v57 = vsub.f32 1.0, %v1237_v26  ;;  %vm1242_vm13 = vweird.f32 %v2279_v51  ;;  %v1312_v30 = vmul.f32 %v2281_v50, %v3889_v0  ;;  %v4389_v41 = vld [vmem:[#allocation11_spill] sm:$0xff] }
 0x328   :  { %vm3948_vm2 = vcmp.eq.f32.partialorder %v1320_v47, 8.507059e+37  ;;  %v1289_v34 = vsel %vm1288_vm12, %v2275_v59, %v1285_v40  ;;  %v1429_v17 = vperm.slane %v1425_v45, %v2607_v8  ;;  %v1435_v18 = vperm.slane %v1431_v4, %v2607_v8  ;;  %v4387_v47 = vld [vmem:[#allocation12_spill] sm:$0xff] }
 0x329   :  { %v1438_v58 = vrot.slane %v1417_v56, 4  ;;  %v1294_v55 = vsel %vm3900_vm15, %v1293_v16, %v1289_v34  ;;  %v1345_v12 = vadd.f32 %v2277_v39, %v1344_v11  ;;  %v1239_v28 = vmul.f32 %v2279_v51, %v1238_v57  ;;  %vm1243_vm15 = vmor %vm1241_vm8, %vm1242_vm13 }
 0x32a   :  { %v1313_v23 = vsub.f32 1.0, %v1312_v30  ;;  %v1295_v31 = vmul.f32 %v2982_v52, %v1294_v55  ;;  %v1450_v59 = vrot.slane %v1429_v17, 4  ;;  %v1436_v1 = vrot.slane %v1423_v25, 4 }
 0x32b   :  { %v1439_v37 = vsel %vm363_vm1, %v1423_v25, %v1438_v58  ;;  %v1349_v32 = vsel %vm1348_vm14, %v2277_v39, %v1345_v12  ;;  %v1240_v35 = vadd.f32 %v2279_v51, %v1239_v28  ;;  %vm1317_vm3 = vweird.f32 %v2281_v50 }
 0x32c   :  { %v1314_v15 = vmul.f32 %v2281_v50, %v1313_v23  ;;  %v1354_v14 = vsel %vm3919_vm7, %v1353_v13, %v1349_v32  ;;  %v1323_v52 = vor.u32 1.1754944e-38, %v1322_v10  ;;  %v1451_v16 = vsel %vm363_vm1, %v1435_v18, %v1450_v59  ;;  %vm1318_vm4 = vmor %vm1316_vm11, %vm1317_vm3 }
 0x32d   :  { %v1437_v44 = vsel %vm363_vm1, %v1436_v1, %v1417_v56  ;;  %v1244_v36 = vsel %vm1243_vm15, %v2279_v51, %v1240_v35  ;;  %v1447_v38 = vperm.slane %v1439_v37, %v2614_v19  ;;  %v1459_v39 = vperm.slane %v1451_v16, %v2614_v19 }
 0x32e   :  { %v1315_v61 = vadd.f32 %v2281_v50, %v1314_v15  ;;  %v1530_v7 = vrot.slane %v1295_v31, 4  ;;  %v1249_v5 = vsel %vm3931_vm10, %v1248_v62, %v1244_v36  ;;  %v3975_v33 = vperm.slane %v1437_v44, %v2614_v19 }
 0x32f   :  { %v1448_v13 = vrot.slane %v1435_v18, 4  ;;  %v1355_v9 = vmul.f32 %v4387_v47, %v1354_v14  ;;  %v1250_v51 = vmul.f32 %v4388_v27, %v1249_v5  ;;  %v1464_v56 = vrot.slane %v1459_v39, 4 }
 0x330   :  { %v1319_v10 = vsel %vm1318_vm4, %v2281_v50, %v1315_v61  ;;  %v1265_v26 = vmul.f32 %v4389_v41, %v1264_v54  ;;  %v1494_v0 = vrot.slane %v3804_v46, 4  ;;  %v1462_v11 = vrot.slane %v3975_v33, 4 }
 0x331   :  { %v1324_v40 = vsel %vm3948_vm2, %v1323_v52, %v1319_v10  ;;  %v1449_v62 = vsel %vm363_vm1, %v1448_v13, %v1429_v17  ;;  %v1465_v45 = vsel %vm363_vm1, %v1464_v56, %v1447_v38  ;;  %v1507_v50 = vsel %vm363_vm1, %v3807_v49, %v1506_v42 }
 0x332   :  { %v1325_v25 = vmul.f32 %v4390_v63, %v1324_v40  ;;  %v1455_v4 = vperm.slane %v1449_v62, %v2614_v19  ;;  %1602 = vrot.lane.b32.xlu1 %v1465_v45, %s2392_s26  ;;  %v1495_v54 = vsel %vm363_vm1, %v3754_v53, %v1494_v0  ;;  %v1525_v46 = vsel %vm363_vm1, %v1524_v22, %v1250_v51  ;;  %v1703_v40 = vld [vmem:[#allocation2 + $0x10] sm:$0xff]  ;;  %v1702_v62 = vld [vmem:[#allocation2 + $0x8] sm:$0xff] }
 0x333   :  { %v1531_v57 = vsel %vm363_vm1, %v1530_v7, %v1265_v26  ;;  %v1404_v30 = vrot.slane %v3657_v48, 4  ;;  %v1542_v43 = vrot.slane %v1355_v9, 4  ;;  %v1515_v17 = vperm.slane %v1507_v50, %v2614_v19  ;;  %v1704_v26 = vld [vmem:[#allocation2 + $0x18] sm:$0xff] }
 0x334   :  { %v1463_v34 = vsel %vm363_vm1, %v1455_v4, %v1462_v11  ;;  %v1516_v53 = vrot.slane %v3856_v20, 4  ;;  %v1529_v24 = vperm.slane %v1525_v46, %v2607_v8  ;;  %v1535_v49 = vperm.slane %v1531_v57, %v2607_v8  ;;  %1733 = vmatpush.msrb.mxu0 %v1704_v26 }
 0x335   :  { %1586 = vrot.lane.b32.xlu0 %v1463_v34, %s2384_s22  ;;  %v1537_v60 = vsel %vm363_vm1, %v1536_v2, %v3876_v21  ;;  %v1503_v48 = vperm.slane %v1495_v54, %v2614_v19  ;;  %v1543_v42 = vsel %vm363_vm1, %v1542_v43, %v1325_v25  ;;  %v1520_v12 = vrot.slane %v1515_v17, 4 }
 0x336   :  { %v1541_v22 = vperm.slane %v1537_v60, %v2607_v8  ;;  %v1547_v18 = vperm.slane %v1543_v42, %v2607_v8  ;;  %v1550_v20 = vrot.slane %v1529_v24, 4  ;;  %v1548_v58 = vrot.slane %v1535_v49, 4  ;;  %1734 = vmatpush.msrb.mxu0 %v1703_v40  ;;  %v2147_v42 = vld [vmem:[%s4247_s9] ss:$0 sm:$0xff] }
 0x337   :  { %v4016_v55 = vsel %vm363_vm1, %v1516_v53, %v3831_v29  ;;  %v1405_v3 = vsel %vm363_vm1, %v1404_v30, %v3629_v6  ;;  %v1521_v23 = vsel %vm363_vm1, %v1520_v12, %v1503_v48  ;;  %v1466_v31 = vrot.slane %v1447_v38, 4 }
 0x338   :  { %v1562_v28 = vrot.slane %v1541_v22, 4  ;;  %v1549_v21 = vsel %vm363_vm1, %v1548_v58, %v1529_v24  ;;  %v1560_v2 = vrot.slane %v1547_v18, 4  ;;  %v1551_v29 = vsel %vm363_vm1, %v1535_v49, %v1550_v20  ;;  %1735 = vmatpush.msrb.mxu0 %v1702_v62  ;;  %v1701_v24 = vld [vmem:[#allocation2] sm:$0xff] }
 0x339   :  { %v1555_v8 = vperm.slane %v1549_v21, %v2614_v19  ;;  %v1467_v6 = vsel %vm363_vm1, %v1459_v39, %v1466_v31  ;;  %v1559_v14 = vperm.slane %v1551_v29, %v2614_v19  ;;  %v1522_v16 = vrot.slane %v1503_v48, 4  ;;  %v2300_v58 = vld [vmem:[%s4267_s28] sm:$0xff]  ;;  %v2301_v21 = vld [vmem:[%s4267_s28 + $0x8] sm:$0xff] }
 0x33a   :  { %v1563_v37 = vsel %vm363_vm1, %v1547_v18, %v1562_v28  ;;  %1604 = vrot.lane.b32.xlu1 %v1521_v23, %s2392_s26  ;;  %v1561_v1 = vsel %vm363_vm1, %v1560_v2, %v1541_v22  ;;  %v1460_v36 = vrot.slane %v1455_v4, 4  ;;  %vm1633_vm6 = vcmask 130048   ;;  %1736 = vmatpush.msrb.mxu0 %v1701_v24 }
 0x33b   :  { %v1571_v59 = vperm.slane %v1563_v37, %v2614_v19  ;;  %v1567_v32 = vperm.slane %v1561_v1, %v2614_v19  ;;  %v1574_v35 = vrot.slane %v1555_v8, 4  ;;  %v1523_v61 = vsel %vm363_vm1, %v1515_v17, %v1522_v16 }
 0x33c   :  { %v1578_v38 = vrot.slane %v1559_v14, 4  ;;  %v1461_v39 = vsel %vm363_vm1, %v1460_v36, %v3975_v33  ;;  %vm1628_vm5 = vcmask 64512   ;;  %vm1638_vm7 = vcmask 195584  }
 0x33d   :  { %1618 = vrot.lane.b32.xlu0 %v1467_v6, %s2391_s25  ;;  %v1576_v15 = vrot.slane %v1571_v59, 4  ;;  %v1575_v52 = vsel %vm363_vm1, %v1567_v32, %v1574_v35  ;;  %v1572_v7 = vrot.slane %v1567_v32, 4  ;;  %v2303_v32 = vld [vmem:[%s4267_s28 + $0x18] sm:$0xff] }
 0x33e   :  { %1590 = vrot.lane.b32.xlu2 %v1575_v52, %s2384_s22  ;;  %v1579_v19 = vsel %vm363_vm1, %v1571_v59, %v1578_v38 }
 0x33f   :  { %v1577_v44 = vsel %vm363_vm1, %v1576_v15, %v1559_v14  ;;  %v1573_v5 = vsel %vm363_vm1, %v1572_v7, %v1555_v8  ;;  %v2302_v8 = vld [vmem:[%s4267_s28 + $0x10] sm:$0xff]  ;;  %v2393_v14 = vmov 32.0  }
 0x340   :  { %2282 = vrcp.f32 %v2393_v14 }
 0x342   :  { %1606 = vrot.lane.b32.xlu1 %v1577_v44, %s2392_s26 }
 0x345   :  { %1620 = vrot.lane.b32.xlu0 %v1523_v61, %s2391_s25 }
 0x346   :  { %v2283_v52 = vpop.eup %2282 }
 0x347   :  { %v1769_v16 = vmul.f32 32.0, %v2283_v52  ;;  %vm1773_vm1 = vweird.f32 %v2283_v52 }
 0x349   :  { %v1770_v44 = vsub.f32 1.0, %v1769_v16 }
 0x34b   :  { %v1771_v36 = vmul.f32 %v2283_v52, %v1770_v44 }
 0x34d   :  { %1622 = vrot.lane.b32.xlu0 %v1579_v19, %s2391_s25  ;;  %v1772_v61 = vadd.f32 %v2283_v52, %v1771_v36  ;;  %v1928_v36 = vld [vmem:[%s4254_s16 + $0x50] sm:$0xff] }
 0x34f   :  { %v4083_v38 = vsel %vm1773_vm1, %v2283_v52, %v1772_v61  ;;  %v1929_v52 = vld [vmem:[%s4254_s16 + $0x58] sm:$0xff] }
 0x35a   :  { %v1617_v27 = vpop.permute.xlu2 %1616 }
 0x373   :  { %v1585_v13 = vpop.permute.xlu0 %1584 }
 0x374   :  { %v1601_v47 = vpop.permute.xlu1 %1600  ;;  %v1629_v9 = vsel %vm1628_vm5, %v1405_v3, %v1585_v13  ;;  %v1589_v33 = vpop.permute.xlu2 %1588 }
 0x375   :  { %v1634_v51 = vsel %vm1633_vm6, %v1629_v9, %v1601_v47  ;;  %v1631_v46 = vsel %vm1628_vm5, %v4016_v55, %v1589_v33 }
 0x376   :  { %v1639_v10 = vsel %vm1638_vm7, %v1634_v51, %v1617_v27 }
 0x377   :  { %2119 = vmatmul.msk.f32.vlgmr.msra.gmra.mxu2 %vm106_vm0, %v1639_v10 }
 0x398   :  { %v1591_v56 = vpop.permute.xlu2 %1590 }
 0x399   :  { %v1632_v41 = vsel %vm1628_vm5, %v1573_v5, %v1591_v56 }
 0x3a4   :  { %v1603_v0 = vpop.permute.xlu1 %1602 }
 0x3a7   :  { %v1587_v63 = vpop.permute.xlu0 %1586 }
 0x3a8   :  { %v1630_v25 = vsel %vm1628_vm5, %v1461_v39, %v1587_v63 }
 0x3a9   :  { %v1635_v11 = vsel %vm1633_vm6, %v1630_v25, %v1603_v0 }
 0x3ac   :  { %v1605_v45 = vpop.permute.xlu1 %1604 }
 0x3ad   :  { %v1636_v30 = vsel %vm1633_vm6, %v1631_v46, %v1605_v45 }
 0x3af   :  { %v1619_v4 = vpop.permute.xlu0 %1618 }
 0x3b0   :  { %v1640_v54 = vsel %vm1638_vm7, %v1635_v11, %v1619_v4  ;;  %v1868_v4 = vld [vmem:[#allocation5 + $0x18] sm:$0xff]  ;;  %v1867_v11 = vld [vmem:[#allocation5 + $0x10] sm:$0xff] }
 0x3b1   :  { %2120 = vmatmul.msk.f32.gmra.mxu2 %vm106_vm0, %v1640_v54  ;;  %1897 = vmatpush.msra.mxu1 %v1868_v4  ;;  %v1866_v54 = vld [vmem:[#allocation5 + $0x8] sm:$0xff] }
 0x3b3   :  { %1898 = vmatpush.msra.mxu1 %v1867_v11  ;;  %v1922_v11 = vld [vmem:[%s4254_s16 + $0x20] sm:$0xff] }
 0x3b4   :  { %v1607_v50 = vpop.permute.xlu1 %1606 }
 0x3b5   :  { %v1637_v57 = vsel %vm1633_vm6, %v1632_v41, %v1607_v50  ;;  %v1865_v50 = vld [vmem:[#allocation5] sm:$0xff]  ;;  %1899 = vmatpush.msra.mxu1 %v1866_v54 }
 0x3b7   :  { %v1621_v43 = vpop.permute.xlu0 %1620  ;;  %1900 = vmatpush.msra.mxu1 %v1865_v50 }
 0x3b8   :  { %v1641_v34 = vsel %vm1638_vm7, %v1636_v30, %v1621_v43 }
 0x3b9   :  { %2121 = vmatmul.msk.f32.vlgmr.msra.gmra.mxu3 %vm106_vm0, %v1641_v34 }
 0x3bf   :  { %v1623_v17 = vpop.permute.xlu0 %1622 }
 0x3c0   :  { %v1642_v53 = vsel %vm1638_vm7, %v1637_v57, %v1623_v17 }
 0x3c1   :  { %2122 = vmatmul.msk.f32.gmra.mxu3 %vm106_vm0, %v1642_v53 }
 0x3fa   :  { %v1666_v49 = vpop.f32.mrf.mxu2 }
 0x3fb   :  { %2123 = vmatmul.msk.f32.vlgmr.msrb.gmra.mxu0 %vm106_vm0, %v1666_v49 }
 0x434   :  { %v1669_v60 = vpop.f32.mrf.mxu2 }
 0x435   :  { %2124 = vmatmul.msk.f32.gmra.mxu0 %vm106_vm0, %v1669_v60  ;;  %v4109_v60 = vld [vmem:[%s4248_s10] ss:$0 sm:$0xff] }
 0x43c   :  { %v1695_v48 = vpop.f32.mrf.mxu3 }
 0x43d   :  { %2125 = vmatmul.msk.f32.gmra.mxu0 %vm106_vm0, %v1695_v48 }
 0x444   :  { %v1698_v22 = vpop.f32.mrf.mxu3 }
 0x445   :  { %2126 = vmatmul.msk.f32.gmra.mxu0 %vm106_vm0, %v1698_v22 }
 0x478   :  { %v1738_v18 = vpop.f32.mrf.mxu0 }
 0x479   :  { %v1739_v20 = vadd.f32 %v2147_v42, %v1738_v18 }
 0x47b   :  { %v1750_v55 = vadd.f32 %v2300_v58, %v1739_v20 }
 0x47d   :  { %v1756_v12 = vsel %vm106_vm0, %v1750_v55, 0.0 }
 0x47e   :  { %1757 = vadd.xlane.f32.xlu2 %v1756_v12 }
 0x4b2   :  { %v1741_v28 = vpop.f32.mrf.mxu0 }
 0x4b3   :  { %v1742_v3 = vadd.f32 %v2147_v42, %v1741_v28 }
 0x4b5   :  { %v1751_v2 = vadd.f32 %v2301_v21, %v1742_v3 }
 0x4b7   :  { %v1759_v23 = vsel %vm106_vm0, %v1751_v2, 0.0 }
 0x4b8   :  { %1760 = vadd.xlane.f32.xlu1 %v1759_v23 }
 0x4ba   :  { %v1744_v31 = vpop.f32.mrf.mxu0 }
 0x4bb   :  { %v1745_v37 = vadd.f32 %v2147_v42, %v1744_v31  ;;  %v1933_v31 = vld [vmem:[%s4254_s16 + $0x78] sm:$0xff] }
 0x4bc   :  { %1938 = vmatpush.msrb.mxu2 %v1933_v31 }
 0x4bd   :  { %v1752_v29 = vadd.f32 %v2302_v8, %v1745_v37  ;;  %v1932_v37 = vld [vmem:[%s4254_s16 + $0x70] sm:$0xff] }
 0x4be   :  { %1939 = vmatpush.msrb.mxu2 %v1932_v37 }
 0x4bf   :  { %v1762_v59 = vsel %vm106_vm0, %v1752_v29, 0.0 }
 0x4c0   :  { %1763 = vadd.xlane.f32.xlu0 %v1762_v59 }
 0x4c2   :  { %v1747_v1 = vpop.f32.mrf.mxu0 }
 0x4c3   :  { %v1748_v6 = vadd.f32 %v2147_v42, %v1747_v1  ;;  %v4114_v42 = vld [vmem:[%s4249_s11] ss:$0 sm:$0xff] }
 0x4c5   :  { %v1753_v35 = vadd.f32 %v2303_v32, %v1748_v6  ;;  %v1930_v32 = vld [vmem:[%s4254_s16 + $0x60] sm:$0xff] }
 0x4c7   :  { %v1765_v15 = vsel %vm106_vm0, %v1753_v35, 0.0 }
 0x4c8   :  { %1766 = vadd.xlane.f32.xlu2 %v1765_v15 }
 0x4f1   :  { %v1758_v39 = vpop.xlane.xlu2 %1757 }
 0x4f2   :  { %v1775_v19 = vmul.f32 %v4083_v38, %v1758_v39 }
 0x4f4   :  { %v1779_v7 = vsub.f32 %v1750_v55, %v1775_v19 }
 0x4f6   :  { %v1783_v5 = vmul.f32 %v1779_v7, %v1779_v7 }
 0x4f8   :  { %v1787_v13 = vsel %vm106_vm0, %v1783_v5, 0.0 }
 0x4f9   :  { %1788 = vadd.xlane.f32.xlu1 %v1787_v13 }
 0x52b   :  { %v1761_v47 = vpop.xlane.xlu1 %1760 }
 0x52c   :  { %v1776_v9 = vmul.f32 %v4083_v38, %v1761_v47  ;;  %v1926_v47 = vld [vmem:[%s4254_s16 + $0x40] sm:$0xff] }
 0x52e   :  { %v4088_v27 = vsub.f32 %v1751_v2, %v1776_v9 }
 0x530   :  { %v1784_v51 = vmul.f32 %v4088_v27, %v4088_v27 }
 0x532   :  { %v1790_v10 = vsel %vm106_vm0, %v1784_v51, 0.0 }
 0x533   :  { %1791 = vadd.xlane.f32.xlu0 %v1790_v10  ;;  %v1764_v33 = vpop.xlane.xlu0 %1763 }
 0x534   :  { %v1777_v56 = vmul.f32 %v4083_v38, %v1764_v33 }
 0x536   :  { %v4094_v41 = vsub.f32 %v1752_v29, %v1777_v56  ;;  %v1931_v29 = vld [vmem:[%s4254_s16 + $0x68] sm:$0xff] }
 0x537   :  { %1940 = vmatpush.msrb.mxu2 %v1931_v29 }
 0x538   :  { %v1785_v26 = vmul.f32 %v4094_v41, %v4094_v41 }
 0x539   :  { %1941 = vmatpush.msrb.mxu2 %v1930_v32 }
 0x53a   :  { %v1793_v40 = vsel %vm106_vm0, %v1785_v26, 0.0  ;;  %v1924_v26 = vld [vmem:[%s4254_s16 + $0x30] sm:$0xff] }
 0x53b   :  { %1794 = vadd.xlane.f32.xlu2 %v1793_v40  ;;  %v1767_v62 = vpop.xlane.xlu2 %1766  ;;  %1942 = vmatpush.msrb.mxu2 %v1929_v52 }
 0x53c   :  { %v1778_v0 = vmul.f32 %v4083_v38, %v1767_v62 }
 0x53d   :  { %1943 = vmatpush.msrb.mxu2 %v1928_v36 }
 0x53e   :  { %v4100_v63 = vsub.f32 %v1753_v35, %v1778_v0 }
 0x540   :  { %v1786_v25 = vmul.f32 %v4100_v63, %v4100_v63 }
 0x542   :  { %v1796_v45 = vsel %vm106_vm0, %v1786_v25, 0.0  ;;  %v1923_v25 = vld [vmem:[%s4254_s16 + $0x28] sm:$0xff] }
 0x543   :  { %1797 = vadd.xlane.f32.xlu1 %v1796_v45 }
 0x56c   :  { %v1789_v46 = vpop.xlane.xlu1 %1788 }
 0x56d   :  { %v1799_v57 = vmul.f32 %v1789_v46, %v4083_v38 }
 0x56f   :  { %v1803_v30 = vadd.f32 1e-05, %v1799_v57 }
 0x571   :  { %2284 = vrsqrt.f32 %v1803_v30  ;;  %vm1813_vm9 = vweird.f32 %v1803_v30 }
 0x577   :  { %v2285_v43 = vpop.eup %2284 }
 0x578   :  { %v1808_v34 = vmul.f32 %v2285_v43, %v1803_v30  ;;  %vm1814_vm8 = vweird.f32 %v2285_v43 }
 0x579   :  { %vm1815_vm10 = vmor %vm1813_vm9, %vm1814_vm8 }
 0x57a   :  { %v1809_v17 = vmul.f32 %v2285_v43, %v1808_v34 }
 0x57c   :  { %v1810_v53 = vmul.f32 0.5, %v1809_v17  ;;  %v1920_v17 = vld [vmem:[%s4254_s16 + $0x10] sm:$0xff] }
 0x57e   :  { %v1811_v24 = vsub.f32 1.5, %v1810_v53  ;;  %v1919_v53 = vld [vmem:[%s4254_s16 + $0x8] sm:$0xff] }
 0x580   :  { %v1812_v49 = vmul.f32 %v2285_v43, %v1811_v24  ;;  %v1918_v24 = vld [vmem:[%s4254_s16] sm:$0xff] }
 0x582   :  { %v1816_v48 = vsel %vm1815_vm10, %v2285_v43, %v1812_v49 }
 0x583   :  { %v1847_v22 = vmul.f32 %v1816_v48, %v1779_v7  ;;  %v1927_v7 = vld [vmem:[%s4254_s16 + $0x48] sm:$0xff] }
 0x584   :  { %1944 = vmatpush.msrb.mxu2 %v1927_v7 }
 0x585   :  { %v1854_v18 = vmul.f32 %v4109_v60, %v1847_v22 }
 0x586   :  { %1945 = vmatpush.msrb.mxu2 %v1926_v47 }
 0x587   :  { %v4118_v20 = vadd.f32 %v4114_v42, %v1854_v18 }
 0x589   :  { %2127 = vmatmul.msk.f32.vlgmr.msra.gmra.mxu1 %vm106_vm0, %v4118_v20 }
 0x5a6   :  { %v1792_v58 = vpop.xlane.xlu0 %1791 }
 0x5a7   :  { %v1800_v55 = vmul.f32 %v1792_v58, %v4083_v38 }
 0x5a9   :  { %v1804_v12 = vadd.f32 1e-05, %v1800_v55 }
 0x5ab   :  { %2286 = vrsqrt.f32 %v1804_v12  ;;  %vm1823_vm12 = vweird.f32 %v1804_v12 }
 0x5ae   :  { %v1795_v28 = vpop.xlane.xlu2 %1794 }
 0x5af   :  { %v1801_v3 = vmul.f32 %v1795_v28, %v4083_v38 }
 0x5b1   :  { %v2287_v21 = vpop.eup %2286  ;;  %v1805_v2 = vadd.f32 1e-05, %v1801_v3 }
 0x5b2   :  { %v1818_v23 = vmul.f32 %v2287_v21, %v1804_v12  ;;  %vm1824_vm11 = vweird.f32 %v2287_v21 }
 0x5b3   :  { %2288 = vrsqrt.f32 %v1805_v2  ;;  %vm1825_vm13 = vmor %vm1823_vm12, %vm1824_vm11  ;;  %vm1833_vm14 = vweird.f32 %v1805_v2 }
 0x5b4   :  { %v1819_v8 = vmul.f32 %v2287_v21, %v1818_v23 }
 0x5b6   :  { %v1820_v59 = vmul.f32 0.5, %v1819_v8  ;;  %v1798_v1 = vpop.xlane.xlu1 %1797 }
 0x5b7   :  { %v1802_v6 = vmul.f32 %v1798_v1, %v4083_v38 }
 0x5b8   :  { %v1821_v35 = vsub.f32 1.5, %v1820_v59 }
 0x5b9   :  { %v2289_v15 = vpop.eup %2288  ;;  %v1806_v14 = vadd.f32 1e-05, %v1802_v6 }
 0x5ba   :  { %v1822_v16 = vmul.f32 %v2287_v21, %v1821_v35  ;;  %v1828_v44 = vmul.f32 %v2289_v15, %v1805_v2  ;;  %vm1834_vm2 = vweird.f32 %v2289_v15  ;;  %v2151_v2 = vld [vmem:[%s4255_s17] ss:$0 sm:$0xff] }
 0x5bb   :  { %2290 = vrsqrt.f32 %v1806_v14  ;;  %vm1835_vm3 = vmor %vm1833_vm14, %vm1834_vm2  ;;  %vm1843_vm4 = vweird.f32 %v1806_v14 }
 0x5bc   :  { %v1826_v61 = vsel %vm1825_vm13, %v2287_v21, %v1822_v16  ;;  %v1829_v39 = vmul.f32 %v2289_v15, %v1828_v44 }
 0x5bd   :  { %v1848_v19 = vmul.f32 %v1826_v61, %v4088_v27  ;;  %v1925_v27 = vld [vmem:[%s4254_s16 + $0x38] sm:$0xff] }
 0x5be   :  { %v1830_v5 = vmul.f32 0.5, %v1829_v39  ;;  %1946 = vmatpush.msrb.mxu2 %v1925_v27 }
 0x5bf   :  { %v1855_v13 = vmul.f32 %v4109_v60, %v1848_v19 }
 0x5c0   :  { %v1831_v9 = vsub.f32 1.5, %v1830_v5  ;;  %1947 = vmatpush.msrb.mxu2 %v1924_v26 }
 0x5c1   :  { %v2291_v51 = vpop.eup %2290  ;;  %v4152_v10 = vadd.f32 %v4114_v42, %v1855_v13 }
 0x5c2   :  { %v1832_v33 = vmul.f32 %v2289_v15, %v1831_v9  ;;  %v1838_v56 = vmul.f32 %v2291_v51, %v1806_v14  ;;  %vm1844_vm15 = vweird.f32 %v2291_v51  ;;  %1948 = vmatpush.msrb.mxu2 %v1923_v25 }
 0x5c3   :  { %2128 = vmatmul.msk.f32.gmra.mxu1 %vm106_vm0, %v4152_v10  ;;  %vm1845_vm6 = vmor %vm1843_vm4, %vm1844_vm15 }
 0x5c4   :  { %v1836_v40 = vsel %vm1835_vm3, %v2289_v15, %v1832_v33  ;;  %v1839_v62 = vmul.f32 %v2291_v51, %v1838_v56  ;;  %1949 = vmatpush.msrb.mxu2 %v1922_v11 }
 0x5c5   :  { %v1849_v0 = vmul.f32 %v1836_v40, %v4094_v41  ;;  %v1921_v41 = vld [vmem:[%s4254_s16 + $0x18] sm:$0xff] }
 0x5c6   :  { %v1840_v45 = vmul.f32 0.5, %v1839_v62  ;;  %1950 = vmatpush.msrb.mxu2 %v1921_v41 }
 0x5c7   :  { %v1856_v4 = vmul.f32 %v4109_v60, %v1849_v0 }
 0x5c8   :  { %v1841_v54 = vsub.f32 1.5, %v1840_v45  ;;  %1951 = vmatpush.msrb.mxu2 %v1920_v17 }
 0x5c9   :  { %v1863_v50 = vadd.f32 %v4114_v42, %v1856_v4 }
 0x5ca   :  { %v1842_v46 = vmul.f32 %v2291_v51, %v1841_v54  ;;  %1952 = vmatpush.msrb.mxu2 %v1919_v53  ;;  %v2153_v53 = vld [vmem:[%s4251_s13] ss:$0 sm:$0xff] }
 0x5cb   :  { %2129 = vmatmul.msk.f32.gmra.mxu1 %vm106_vm0, %v1863_v50 }
 0x5cc   :  { %v1846_v57 = vsel %vm1845_vm6, %v2291_v51, %v1842_v46  ;;  %1953 = vmatpush.msrb.mxu2 %v1918_v24 }
 0x5cd   :  { %v1850_v30 = vmul.f32 %v1846_v57, %v4100_v63  ;;  %v2150_v63 = vld [vmem:[%s4253_s15] ss:$0 sm:$0xff] }
 0x5cf   :  { %v1857_v43 = vmul.f32 %v4109_v60, %v1850_v30 }
 0x5d1   :  { %v1864_v34 = vadd.f32 %v4114_v42, %v1857_v43 }
 0x5d3   :  { %2130 = vmatmul.msk.f32.gmra.mxu1 %vm106_vm0, %v1864_v34 }
 0x606   :  { %v1902_v49 = vpop.f32.mrf.mxu1 }
 0x607   :  { %v1903_v60 = vadd.f32 %v2150_v63, %v1902_v49 }
 0x609   :  { %v1914_v48 = vmax.f32 %v1903_v60, 0.0 }
 0x60b   :  { %1954 = vmatmul.f32.vlgmr.msrb.gmra.mxu2 %v1914_v48 }
 0x640   :  { %v1905_v22 = vpop.f32.mrf.mxu1 }
 0x641   :  { %v1906_v42 = vadd.f32 %v2150_v63, %v1905_v22 }
 0x643   :  { %v1915_v18 = vmax.f32 %v1906_v42, 0.0 }
 0x645   :  { %1957 = vmatmul.f32.gmra.mxu2 %v1915_v18 }
 0x648   :  { %v1908_v58 = vpop.f32.mrf.mxu1 }
 0x649   :  { %v1909_v55 = vadd.f32 %v2150_v63, %v1908_v58 }
 0x64b   :  { %v1916_v12 = vmax.f32 %v1909_v55, 0.0 }
 0x64d   :  { %1960 = vmatmul.f32.gmra.mxu2 %v1916_v12 }
 0x650   :  { %v1911_v28 = vpop.f32.mrf.mxu1 }
 0x651   :  { %v1912_v3 = vadd.f32 %v2150_v63, %v1911_v28 }
 0x653   :  { %v1917_v21 = vmax.f32 %v1912_v3, 0.0 }
 0x655   :  { %1963 = vmatmul.f32.gmra.mxu2 %v1917_v21 }
 0x68e   :  { %v1955_v23 = vpop.f32.mrf.mxu2 }
 0x68f   :  { %v1956_v31 = vadd.f32 %v2151_v2, %v1955_v23 }
 0x691   :  { %v1967_v37 = vadd.f32 %v1956_v31, %v4118_v20 }
 0x693   :  { %v1973_v8 = vsel %vm106_vm0, %v1967_v37, 0.0 }
 0x694   :  { %1974 = vadd.xlane.f32.xlu0 %v1973_v8 }
 0x6c8   :  { %v1958_v29 = vpop.f32.mrf.mxu2 }
 0x6c9   :  { %v1959_v59 = vadd.f32 %v2151_v2, %v1958_v29 }
 0x6cb   :  { %v1968_v1 = vadd.f32 %v1959_v59, %v4152_v10 }
 0x6cd   :  { %v1976_v6 = vsel %vm106_vm0, %v1968_v1, 0.0 }
 0x6ce   :  { %1977 = vadd.xlane.f32.xlu2 %v1976_v6 }
 0x6d0   :  { %v1961_v32 = vpop.f32.mrf.mxu2 }
 0x6d1   :  { %v1962_v35 = vadd.f32 %v2151_v2, %v1961_v32 }
 0x6d3   :  { %v1969_v15 = vadd.f32 %v1962_v35, %v1863_v50 }
 0x6d5   :  { %v1979_v14 = vsel %vm106_vm0, %v1969_v15, 0.0 }
 0x6d6   :  { %1980 = vadd.xlane.f32.xlu1 %v1979_v14 }
 0x6d8   :  { %v1964_v52 = vpop.f32.mrf.mxu2 }
 0x6d9   :  { %v1965_v16 = vadd.f32 %v2151_v2, %v1964_v52 }
 0x6db   :  { %v1970_v44 = vadd.f32 %v1965_v16, %v1864_v34  ;;  %v2152_v34 = vld [vmem:[%s4250_s12] ss:$0 sm:$0xff]  ;;  %s2394_s12 = smov [#allocation7]  }
 0x6dc   :  { %s2083_s13 = sshll.u32 %s2394_s12, 4  ;;  %s2084_s13 = int_to_ptr.vmem [resolvable:$true] %s2083_s13 }
 0x6dd   :  { %v1982_v20 = vsel %vm106_vm0, %v1970_v44, 0.0 }
 0x6de   :  { %1983 = vadd.xlane.f32.xlu0 %v1982_v20 }
 0x707   :  { %v1975_v36 = vpop.xlane.xlu0 %1974 }
 0x708   :  { %v1985_v61 = vmul.f32 %v1975_v36, %v4083_v38 }
 0x70a   :  { %v1989_v39 = vsub.f32 %v1967_v37, %v1985_v61 }
 0x70c   :  { %v1993_v19 = vmul.f32 %v1989_v39, %v1989_v39 }
 0x70e   :  { %v1997_v7 = vsel %vm106_vm0, %v1993_v19, 0.0 }
 0x70f   :  { %1998 = vadd.xlane.f32.xlu2 %v1997_v7 }
 0x741   :  { %v1978_v5 = vpop.xlane.xlu2 %1977 }
 0x742   :  { %v1986_v13 = vmul.f32 %v1978_v5, %v4083_v38 }
 0x744   :  { %v1990_v47 = vsub.f32 %v1968_v1, %v1986_v13 }
 0x746   :  { %v1994_v9 = vmul.f32 %v1990_v47, %v1990_v47 }
 0x748   :  { %v2000_v51 = vsel %vm106_vm0, %v1994_v9, 0.0 }
 0x749   :  { %v1981_v10 = vpop.xlane.xlu1 %1980  ;;  %2001 = vadd.xlane.f32.xlu1 %v2000_v51 }
 0x74a   :  { %v1987_v27 = vmul.f32 %v1981_v10, %v4083_v38 }
 0x74c   :  { %v4205_v33 = vsub.f32 %v1969_v15, %v1987_v27 }
 0x74e   :  { %v1995_v56 = vmul.f32 %v4205_v33, %v4205_v33 }
 0x750   :  { %v2003_v26 = vsel %vm106_vm0, %v1995_v56, 0.0 }
 0x751   :  { %v1984_v40 = vpop.xlane.xlu0 %1983  ;;  %2004 = vadd.xlane.f32.xlu0 %v2003_v26 }
 0x752   :  { %v1988_v62 = vmul.f32 %v1984_v40, %v4083_v38 }
 0x754   :  { %v4211_v0 = vsub.f32 %v1970_v44, %v1988_v62 }
 0x756   :  { %v1996_v25 = vmul.f32 %v4211_v0, %v4211_v0 }
 0x758   :  { %v2006_v45 = vsel %vm106_vm0, %v1996_v25, 0.0 }
 0x759   :  { %2007 = vadd.xlane.f32.xlu2 %v2006_v45 }
 0x782   :  { %v1999_v4 = vpop.xlane.xlu2 %1998 }
 0x783   :  { %v2009_v11 = vmul.f32 %v1999_v4, %v4083_v38 }
 0x785   :  { %v2013_v54 = vadd.f32 1e-05, %v2009_v11 }
 0x787   :  { %2292 = vrsqrt.f32 %v2013_v54  ;;  %vm2023_vm7 = vweird.f32 %v2013_v54 }
 0x78d   :  { %v2293_v50 = vpop.eup %2292 }
 0x78e   :  { %v2018_v41 = vmul.f32 %v2293_v50, %v2013_v54  ;;  %vm2024_vm5 = vweird.f32 %v2293_v50 }
 0x78f   :  { %vm2025_vm1 = vmor %vm2023_vm7, %vm2024_vm5 }
 0x790   :  { %v2019_v46 = vmul.f32 %v2293_v50, %v2018_v41 }
 0x792   :  { %v2020_v57 = vmul.f32 0.5, %v2019_v46 }
 0x794   :  { %v2021_v30 = vsub.f32 1.5, %v2020_v57 }
 0x796   :  { %v2022_v43 = vmul.f32 %v2293_v50, %v2021_v30 }
 0x798   :  { %v2026_v17 = vsel %vm2025_vm1, %v2293_v50, %v2022_v43 }
 0x799   :  { %v2057_v24 = vmul.f32 %v2026_v17, %v1989_v39 }
 0x79b   :  { %v2064_v63 = vmul.f32 %v2152_v34, %v2057_v24 }
 0x79d   :  { %v2071_v49 = vadd.f32 %v2153_v53, %v2064_v63 }
 0x79f   :  { %2075 = vst.msk [vmem:[#allocation7] sm:$0xff] %vm106_vm0, %v2071_v49 }
 0x7bc   :  { %v2002_v60 = vpop.xlane.xlu1 %2001 }
 0x7bd   :  { %v2010_v48 = vmul.f32 %v2002_v60, %v4083_v38 }
 0x7bf   :  { %v2014_v22 = vadd.f32 1e-05, %v2010_v48 }
 0x7c1   :  { %2294 = vrsqrt.f32 %v2014_v22  ;;  %vm2033_vm9 = vweird.f32 %v2014_v22 }
 0x7c4   :  { %v2005_v42 = vpop.xlane.xlu0 %2004 }
 0x7c5   :  { %v2011_v18 = vmul.f32 %v2005_v42, %v4083_v38 }
 0x7c7   :  { %v2295_v58 = vpop.eup %2294  ;;  %v2015_v55 = vadd.f32 1e-05, %v2011_v18 }
 0x7c8   :  { %v2028_v12 = vmul.f32 %v2295_v58, %v2014_v22  ;;  %vm2034_vm8 = vweird.f32 %v2295_v58 }
 0x7c9   :  { %2296 = vrsqrt.f32 %v2015_v55  ;;  %vm2035_vm10 = vmor %vm2033_vm9, %vm2034_vm8  ;;  %vm2043_vm12 = vweird.f32 %v2015_v55 }
 0x7ca   :  { %v2029_v28 = vmul.f32 %v2295_v58, %v2028_v12 }
 0x7cc   :  { %v2030_v3 = vmul.f32 0.5, %v2029_v28  ;;  %v2008_v21 = vpop.xlane.xlu2 %2007 }
 0x7cd   :  { %v2012_v2 = vmul.f32 %v2008_v21, %v4083_v38 }
 0x7ce   :  { %v2031_v23 = vsub.f32 1.5, %v2030_v3 }
 0x7cf   :  { %v2297_v31 = vpop.eup %2296  ;;  %v2016_v37 = vadd.f32 1e-05, %v2012_v2 }
 0x7d0   :  { %v2032_v8 = vmul.f32 %v2295_v58, %v2031_v23  ;;  %v2038_v29 = vmul.f32 %v2297_v31, %v2015_v55  ;;  %vm2044_vm11 = vweird.f32 %v2297_v31 }
 0x7d1   :  { %2298 = vrsqrt.f32 %v2016_v37  ;;  %vm2045_vm13 = vmor %vm2043_vm12, %vm2044_vm11  ;;  %vm2053_vm14 = vweird.f32 %v2016_v37 }
 0x7d2   :  { %v2036_v59 = vsel %vm2035_vm10, %v2295_v58, %v2032_v8  ;;  %v2039_v1 = vmul.f32 %v2297_v31, %v2038_v29 }
 0x7d3   :  { %v2058_v6 = vmul.f32 %v2036_v59, %v1990_v47 }
 0x7d4   :  { %v2040_v32 = vmul.f32 0.5, %v2039_v1 }
 0x7d5   :  { %v2065_v35 = vmul.f32 %v2152_v34, %v2058_v6 }
 0x7d6   :  { %v2041_v15 = vsub.f32 1.5, %v2040_v32 }
 0x7d7   :  { %v2299_v14 = vpop.eup %2298  ;;  %v2072_v52 = vadd.f32 %v2153_v53, %v2065_v35 }
 0x7d8   :  { %v2042_v16 = vmul.f32 %v2297_v31, %v2041_v15  ;;  %v2048_v38 = vmul.f32 %v2299_v14, %v2016_v37  ;;  %vm2054_vm2 = vweird.f32 %v2299_v14 }
 0x7d9   :  { %2076 = vst.msk [vmem:[#allocation7 + $0x8] sm:$0xff] %vm106_vm0, %v2072_v52  ;;  %vm2055_vm3 = vmor %vm2053_vm14, %vm2054_vm2 }
 0x7da   :  { %v2046_v44 = vsel %vm2045_vm13, %v2297_v31, %v2042_v16  ;;  %v2049_v20 = vmul.f32 %v2299_v14, %v2048_v38 }
 0x7db   :  { %v2059_v36 = vmul.f32 %v2046_v44, %v4205_v33 }
 0x7dc   :  { %v2050_v61 = vmul.f32 0.5, %v2049_v20 }
 0x7dd   :  { %v2066_v39 = vmul.f32 %v2152_v34, %v2059_v36 }
 0x7de   :  { %v2051_v19 = vsub.f32 1.5, %v2050_v61 }
 0x7df   :  { %v2073_v7 = vadd.f32 %v2153_v53, %v2066_v39 }
 0x7e0   :  { %v2052_v5 = vmul.f32 %v2299_v14, %v2051_v19 }
 0x7e1   :  { %2077 = vst.msk [vmem:[#allocation7 + $0x10] sm:$0xff] %vm106_vm0, %v2073_v7 }
 0x7e2   :  { %v2056_v13 = vsel %vm2055_vm3, %v2299_v14, %v2052_v5 }
 0x7e3   :  { %v2060_v47 = vmul.f32 %v2056_v13, %v4211_v0 }
 0x7e5   :  { %v2067_v9 = vmul.f32 %v2152_v34, %v2060_v47 }
 0x7e7   :  { %v2074_v51 = vadd.f32 %v2153_v53, %v2067_v9 }
 0x7e9   :  { %2078 = vst.msk [vmem:[#allocation7 + $0x18] sm:$0xff] %vm106_vm0, %v2074_v51 }
 0x7ea   :  { %2091 = dma.vmem_to_hbm [thread:$0]  %s2084_s13, 512, %s2086_s1, [#allocation4], %s2383_s21, %s2383_s21, %s2384_s22  }
 0x7eb   :  { %2380 = dma.done.wait [#allocation4], 512  }
 0x7ec   :  { %2381 = vsyncadd [#allocation4], 4294966784 }
 0x7ed   :  { %2096 = vsyncpa [#allocation3], 1 }
 0x7ee   :  { %2097 = vsyncpa [#allocation6], 1 }
 0x7ef   :  { %2098 = vsyncpa [#allocation4], 1 }

</bundles_post_ra>
